<compile_context>
chip_gen: v7x
topology: tpu7x:2x2x1
jax: 0.10.0
libtpu: 0.0.40
codegen_flags: <defaults>
</compile_context>

<pallas_src>
import jax
import jax.numpy as jnp
from jax.experimental import pallas as pl
from jax.experimental.pallas import tpu as pltpu


def _softplus(x):
    # Matches torch.nn.functional.softplus(x, beta=1, threshold=20):
    #   x where x > 20, else log(1 + exp(x)) (exp pre-clamped, no overflow).
    safe = jnp.minimum(x, 20.0)
    return jnp.where(x > 20.0, x, jnp.log1p(jnp.exp(safe)))


def _ann_kernel(xt_ref,
                w1_ref, b1_ref,
                w2_ref, b2_ref,
                w3_ref, b3_ref,
                w4_ref, b4_ref,
                w5t_ref, b5_ref,
                o_ref):
    # xt_ref : (in, tile_b)        batch on lanes
    # w1_ref : (hidden, in)        b*_ref : (features, 1)
    # w2..w4 : (hidden, hidden)
    # w5t_ref: (hidden, out)       o_ref  : (out, tile_b)
    in_dim = xt_ref.shape[0]
    out_dim = o_ref.shape[0]

    # ---- Layer 1: K = in_dim (tiny) -> VPU broadcast FMAs, skip the MXU.
    h = None
    for k in range(in_dim):
        term = w1_ref[:, k:k + 1] * xt_ref[k:k + 1, :]     # (hidden, tile_b)
        h = term if h is None else h + term
    h = _softplus(h + b1_ref[...])

    # ---- Layers 2-4: dense hidden x hidden matmuls, batch on the MXU N axis.
    for w_ref, b_ref in ((w2_ref, b2_ref), (w3_ref, b3_ref), (w4_ref, b4_ref)):
        h = jnp.dot(w_ref[...], h, preferred_element_type=jnp.float32)
        h = _softplus(h + b_ref[...])

    # ---- Layer 5: N = out_dim (tiny) -> per-row multiply + sublane reduction.
    for j in range(out_dim):
        col = w5t_ref[:, j:j + 1]                          # (hidden, 1)
        row = jnp.sum(col * h, axis=0, keepdims=True)      # (1, tile_b)
        row = row + b5_ref[j:j + 1, :]
        o_ref[j:j + 1, :] = row.astype(o_ref.dtype)


def ann_forward(x, params, *, max_tile_b=512):
    """x: (B, in_neuron) float32.
    params: list of 5 (W, b) pairs in PyTorch orientation, W: (out, in), b: (out,)."""
    B, in_dim = x.shape
    (w1, b1), (w2, b2), (w3, b3), (w4, b4), (w5, b5) = params
    out_dim = w5.shape[0]

    # Batch tile: single tile when small (no per-step overhead); otherwise
    # 512-wide lane tiles (multiple of 128, keeps live activations in vregs)
    # with the batch padded up to a multiple of the tile.
    if B <= max_tile_b:
        tile_b = B
        b_pad = B
    else:
        tile_b = max_tile_b
        b_pad = pl.cdiv(B, tile_b) * tile_b

    xt = x.T                                               # (in, B)
    if b_pad != B:
        xt = jnp.pad(xt, ((0, 0), (0, b_pad - B)))

    kernel_args = [
        xt,
        w1, b1.reshape(-1, 1),
        w2, b2.reshape(-1, 1),
        w3, b3.reshape(-1, 1),
        w4, b4.reshape(-1, 1),
        w5.T, b5.reshape(-1, 1),   # layer-5 weight pre-transposed to (hidden, out)
    ]

    # Weights/biases: whole-array VMEM residents (no pipeline double-buffering).
    vmem_full = pl.BlockSpec(memory_space=pltpu.MemorySpace.VMEM)
    in_specs = [pl.BlockSpec((in_dim, tile_b), lambda i: (0, i))] + [vmem_full] * 10
    out_spec = pl.BlockSpec((out_dim, tile_b), lambda i: (0, i))

    yt = pl.pallas_call(
        _ann_kernel,
        out_shape=jax.ShapeDtypeStruct((out_dim, b_pad), x.dtype),
        grid_spec=pltpu.PrefetchScalarGridSpec(
            num_scalar_prefetch=0,
            grid=(b_pad // tile_b,),
            in_specs=in_specs,
            out_specs=out_spec,
        ),
        compiler_params=pltpu.CompilerParams(
            dimension_semantics=("parallel",)),
    )(*kernel_args)

    return yt.T[:B]                                        # (B, out)


def init_ann_params(key, in_neuron, hidden_neuron, out_neuron):
    """nn.Linear-style init (uniform +-1/sqrt(fan_in)), PyTorch orientation."""
    dims = [in_neuron, hidden_neuron, hidden_neuron, hidden_neuron,
            hidden_neuron, out_neuron]
    params = []
    for i in range(5):
        fan_in, fan_out = dims[i], dims[i + 1]
        key, kw, kb = jax.random.split(key, 3)
        bound = 1.0 / float(fan_in) ** 0.5
        w = jax.random.uniform(kw, (fan_out, fan_in), jnp.float32, -bound, bound)
        b = jax.random.uniform(kb, (fan_out,), jnp.float32, -bound, bound)
        params.append((w, b))
    return params


def ann_reference(x, params):
    """Pure-JAX reference of the PyTorch forward for verification."""
    h = x
    for i, (w, b) in enumerate(params):
        h = h @ w.T + b
        if i < 4:
            h = jnp.where(h > 20.0, h, jnp.log1p(jnp.exp(jnp.minimum(h, 20.0))))
    return h


if __name__ == "__main__":
    in_neuron, hidden_neuron, out_neuron = 4, 32, 2

    key = jax.random.PRNGKey(0)
    key, k1, k2 = jax.random.split(key, 3)
    params = init_ann_params(key, in_neuron, hidden_neuron, out_neuron)

    # Two batch sizes: single-tile path (256) and padded multi-tile path (640).
    for batch, kx in ((256, k1), (640, k2)):
        x = jax.random.normal(kx, (batch, in_neuron), dtype=jnp.float32)
        y = jax.block_until_ready(ann_forward(x, params))
        y_ref = ann_reference(x, params)
        assert y.shape == (batch, out_neuron)
        assert jnp.allclose(y, y_ref, atol=1e-4, rtol=1e-4), \
            f"mismatch vs reference at batch={batch}"

    print("KERNEL_OK")
</pallas_src>

<mosaic_0001>
module attributes {stable_mosaic.version = 11 : i64} {
  func.func @_ann_kernel(%arg0: i32, %arg1: memref<4x256xf32, #tpu.memory_space<vmem>>, %arg2: memref<32x4xf32, #tpu.memory_space<vmem>>, %arg3: memref<32x1xf32, #tpu.memory_space<vmem>>, %arg4: memref<32x32xf32, #tpu.memory_space<vmem>>, %arg5: memref<32x1xf32, #tpu.memory_space<vmem>>, %arg6: memref<32x32xf32, #tpu.memory_space<vmem>>, %arg7: memref<32x1xf32, #tpu.memory_space<vmem>>, %arg8: memref<32x32xf32, #tpu.memory_space<vmem>>, %arg9: memref<32x1xf32, #tpu.memory_space<vmem>>, %arg10: memref<32x2xf32, #tpu.memory_space<vmem>>, %arg11: memref<2x1xf32, #tpu.memory_space<vmem>>, %arg12: memref<2x256xf32, #tpu.memory_space<vmem>>) attributes {dimension_semantics = [#tpu.dimension_semantics<parallel>], iteration_bounds = array<i64: 1>, scalar_prefetch = 0 : i64, scratch_operands = 0 : i64, tpu.core_type = #tpu.core_type<tc>, window_params = [{transform_indices = @transform_0, window_bounds = array<i64: 4, 256>}, {pipeline_mode = #tpu.pipeline_mode<synchronous>, transform_indices = @transform_1, window_bounds = array<i64: 32, 4>}, {pipeline_mode = #tpu.pipeline_mode<synchronous>, transform_indices = @transform_2, window_bounds = array<i64: 32, 1>}, {pipeline_mode = #tpu.pipeline_mode<synchronous>, transform_indices = @transform_3, window_bounds = array<i64: 32, 32>}, {pipeline_mode = #tpu.pipeline_mode<synchronous>, transform_indices = @transform_4, window_bounds = array<i64: 32, 1>}, {pipeline_mode = #tpu.pipeline_mode<synchronous>, transform_indices = @transform_5, window_bounds = array<i64: 32, 32>}, {pipeline_mode = #tpu.pipeline_mode<synchronous>, transform_indices = @transform_6, window_bounds = array<i64: 32, 1>}, {pipeline_mode = #tpu.pipeline_mode<synchronous>, transform_indices = @transform_7, window_bounds = array<i64: 32, 32>}, {pipeline_mode = #tpu.pipeline_mode<synchronous>, transform_indices = @transform_8, window_bounds = array<i64: 32, 1>}, {pipeline_mode = #tpu.pipeline_mode<synchronous>, transform_indices = @transform_9, window_bounds = array<i64: 32, 2>}, {pipeline_mode = #tpu.pipeline_mode<synchronous>, transform_indices = @transform_10, window_bounds = array<i64: 2, 1>}, {transform_indices = @transform_11, window_bounds = array<i64: 2, 256>}]} {
    %c0 = arith.constant 0 : index
    %c0_0 = arith.constant 0 : index
    %0 = vector.load %arg2[%c0, %c0_0] : memref<32x4xf32, #tpu.memory_space<vmem>>, vector<32x1xf32>
    %c0_1 = arith.constant 0 : index
    %c0_2 = arith.constant 0 : index
    %1 = vector.load %arg1[%c0_1, %c0_2] : memref<4x256xf32, #tpu.memory_space<vmem>>, vector<1x256xf32>
    %2 = vector.broadcast %0 : vector<32x1xf32> to vector<32x256xf32>
    %3 = vector.broadcast %1 : vector<1x256xf32> to vector<32x256xf32>
    %4 = arith.mulf %2, %3 : vector<32x256xf32>
    %c0_3 = arith.constant 0 : index
    %c1 = arith.constant 1 : index
    %5 = vector.load %arg2[%c0_3, %c1] : memref<32x4xf32, #tpu.memory_space<vmem>>, vector<32x1xf32>
    %c1_4 = arith.constant 1 : index
    %c0_5 = arith.constant 0 : index
    %6 = vector.load %arg1[%c1_4, %c0_5] : memref<4x256xf32, #tpu.memory_space<vmem>>, vector<1x256xf32>
    %7 = vector.broadcast %5 : vector<32x1xf32> to vector<32x256xf32>
    %8 = vector.broadcast %6 : vector<1x256xf32> to vector<32x256xf32>
    %9 = arith.mulf %7, %8 : vector<32x256xf32>
    %10 = arith.addf %4, %9 : vector<32x256xf32>
    %c0_6 = arith.constant 0 : index
    %c2 = arith.constant 2 : index
    %11 = vector.load %arg2[%c0_6, %c2] : memref<32x4xf32, #tpu.memory_space<vmem>>, vector<32x1xf32>
    %c2_7 = arith.constant 2 : index
    %c0_8 = arith.constant 0 : index
    %12 = vector.load %arg1[%c2_7, %c0_8] : memref<4x256xf32, #tpu.memory_space<vmem>>, vector<1x256xf32>
    %13 = vector.broadcast %11 : vector<32x1xf32> to vector<32x256xf32>
    %14 = vector.broadcast %12 : vector<1x256xf32> to vector<32x256xf32>
    %15 = arith.mulf %13, %14 : vector<32x256xf32>
    %16 = arith.addf %10, %15 : vector<32x256xf32>
    %c0_9 = arith.constant 0 : index
    %c3 = arith.constant 3 : index
    %17 = vector.load %arg2[%c0_9, %c3] : memref<32x4xf32, #tpu.memory_space<vmem>>, vector<32x1xf32>
    %c3_10 = arith.constant 3 : index
    %c0_11 = arith.constant 0 : index
    %18 = vector.load %arg1[%c3_10, %c0_11] : memref<4x256xf32, #tpu.memory_space<vmem>>, vector<1x256xf32>
    %19 = vector.broadcast %17 : vector<32x1xf32> to vector<32x256xf32>
    %20 = vector.broadcast %18 : vector<1x256xf32> to vector<32x256xf32>
    %21 = arith.mulf %19, %20 : vector<32x256xf32>
    %22 = arith.addf %16, %21 : vector<32x256xf32>
    %c0_12 = arith.constant 0 : index
    %c0_13 = arith.constant 0 : index
    %23 = vector.load %arg3[%c0_12, %c0_13] : memref<32x1xf32, #tpu.memory_space<vmem>>, vector<32x1xf32>
    %24 = vector.broadcast %23 : vector<32x1xf32> to vector<32x256xf32>
    %25 = arith.addf %22, %24 : vector<32x256xf32>
    %cst = arith.constant 2.000000e+01 : f32
    %26 = vector.broadcast %cst : f32 to vector<32x256xf32>
    %27 = arith.minimumf %25, %26 : vector<32x256xf32>
    %cst_14 = arith.constant 2.000000e+01 : f32
    %28 = vector.broadcast %cst_14 : f32 to vector<32x256xf32>
    %29 = arith.cmpf ogt, %25, %28 : vector<32x256xf32>
    %30 = math.exp %27 : vector<32x256xf32>
    %31 = math.log1p %30 : vector<32x256xf32>
    %32 = arith.select %29, %25, %31 : vector<32x256xi1>, vector<32x256xf32>
    %c0_15 = arith.constant 0 : index
    %c0_16 = arith.constant 0 : index
    %33 = vector.load %arg4[%c0_15, %c0_16] : memref<32x32xf32, #tpu.memory_space<vmem>>, vector<32x32xf32>
    %cst_17 = arith.constant dense<0.000000e+00> : vector<32x256xf32>
    %34 = tpu.matmul %33, %32, %cst_17 {dimension_numbers = #tpu.dot_dimension_numbers<[1], [0], [0], [1], [0, 0, 1, 1], [], []>} : vector<32x32xf32>, vector<32x256xf32>, vector<32x256xf32> -> vector<32x256xf32>
    %c0_18 = arith.constant 0 : index
    %c0_19 = arith.constant 0 : index
    %35 = vector.load %arg5[%c0_18, %c0_19] : memref<32x1xf32, #tpu.memory_space<vmem>>, vector<32x1xf32>
    %36 = vector.broadcast %35 : vector<32x1xf32> to vector<32x256xf32>
    %37 = arith.addf %34, %36 : vector<32x256xf32>
    %cst_20 = arith.constant 2.000000e+01 : f32
    %38 = vector.broadcast %cst_20 : f32 to vector<32x256xf32>
    %39 = arith.minimumf %37, %38 : vector<32x256xf32>
    %cst_21 = arith.constant 2.000000e+01 : f32
    %40 = vector.broadcast %cst_21 : f32 to vector<32x256xf32>
    %41 = arith.cmpf ogt, %37, %40 : vector<32x256xf32>
    %42 = math.exp %39 : vector<32x256xf32>
    %43 = math.log1p %42 : vector<32x256xf32>
    %44 = arith.select %41, %37, %43 : vector<32x256xi1>, vector<32x256xf32>
    %c0_22 = arith.constant 0 : index
    %c0_23 = arith.constant 0 : index
    %45 = vector.load %arg6[%c0_22, %c0_23] : memref<32x32xf32, #tpu.memory_space<vmem>>, vector<32x32xf32>
    %cst_24 = arith.constant dense<0.000000e+00> : vector<32x256xf32>
    %46 = tpu.matmul %45, %44, %cst_24 {dimension_numbers = #tpu.dot_dimension_numbers<[1], [0], [0], [1], [0, 0, 1, 1], [], []>} : vector<32x32xf32>, vector<32x256xf32>, vector<32x256xf32> -> vector<32x256xf32>
    %c0_25 = arith.constant 0 : index
    %c0_26 = arith.constant 0 : index
    %47 = vector.load %arg7[%c0_25, %c0_26] : memref<32x1xf32, #tpu.memory_space<vmem>>, vector<32x1xf32>
    %48 = vector.broadcast %47 : vector<32x1xf32> to vector<32x256xf32>
    %49 = arith.addf %46, %48 : vector<32x256xf32>
    %cst_27 = arith.constant 2.000000e+01 : f32
    %50 = vector.broadcast %cst_27 : f32 to vector<32x256xf32>
    %51 = arith.minimumf %49, %50 : vector<32x256xf32>
    %cst_28 = arith.constant 2.000000e+01 : f32
    %52 = vector.broadcast %cst_28 : f32 to vector<32x256xf32>
    %53 = arith.cmpf ogt, %49, %52 : vector<32x256xf32>
    %54 = math.exp %51 : vector<32x256xf32>
    %55 = math.log1p %54 : vector<32x256xf32>
    %56 = arith.select %53, %49, %55 : vector<32x256xi1>, vector<32x256xf32>
    %c0_29 = arith.constant 0 : index
    %c0_30 = arith.constant 0 : index
    %57 = vector.load %arg8[%c0_29, %c0_30] : memref<32x32xf32, #tpu.memory_space<vmem>>, vector<32x32xf32>
    %cst_31 = arith.constant dense<0.000000e+00> : vector<32x256xf32>
    %58 = tpu.matmul %57, %56, %cst_31 {dimension_numbers = #tpu.dot_dimension_numbers<[1], [0], [0], [1], [0, 0, 1, 1], [], []>} : vector<32x32xf32>, vector<32x256xf32>, vector<32x256xf32> -> vector<32x256xf32>
    %c0_32 = arith.constant 0 : index
    %c0_33 = arith.constant 0 : index
    %59 = vector.load %arg9[%c0_32, %c0_33] : memref<32x1xf32, #tpu.memory_space<vmem>>, vector<32x1xf32>
    %60 = vector.broadcast %59 : vector<32x1xf32> to vector<32x256xf32>
    %61 = arith.addf %58, %60 : vector<32x256xf32>
    %cst_34 = arith.constant 2.000000e+01 : f32
    %62 = vector.broadcast %cst_34 : f32 to vector<32x256xf32>
    %63 = arith.minimumf %61, %62 : vector<32x256xf32>
    %cst_35 = arith.constant 2.000000e+01 : f32
    %64 = vector.broadcast %cst_35 : f32 to vector<32x256xf32>
    %65 = arith.cmpf ogt, %61, %64 : vector<32x256xf32>
    %66 = math.exp %63 : vector<32x256xf32>
    %67 = math.log1p %66 : vector<32x256xf32>
    %68 = arith.select %65, %61, %67 : vector<32x256xi1>, vector<32x256xf32>
    %c0_36 = arith.constant 0 : index
    %c0_37 = arith.constant 0 : index
    %69 = vector.load %arg10[%c0_36, %c0_37] : memref<32x2xf32, #tpu.memory_space<vmem>>, vector<32x1xf32>
    %70 = vector.broadcast %69 : vector<32x1xf32> to vector<32x256xf32>
    %71 = arith.mulf %70, %68 : vector<32x256xf32>
    %cst_38 = arith.constant dense<0.000000e+00> : vector<256xf32>
    %72 = vector.multi_reduction <add>, %71, %cst_38 [0] : vector<32x256xf32> to vector<256xf32>
    %73 = vector.shape_cast %72 : vector<256xf32> to vector<1x256xf32>
    %c0_39 = arith.constant 0 : index
    %c0_40 = arith.constant 0 : index
    %74 = vector.load %arg11[%c0_39, %c0_40] : memref<2x1xf32, #tpu.memory_space<vmem>>, vector<1x1xf32>
    %75 = vector.broadcast %74 : vector<1x1xf32> to vector<1x256xf32>
    %76 = arith.addf %73, %75 : vector<1x256xf32>
    %c0_41 = arith.constant 0 : index
    %c0_42 = arith.constant 0 : index
    %77 = vector.load %arg12[%c0_41, %c0_42] : memref<2x256xf32, #tpu.memory_space<vmem>>, vector<1x256xf32>
    tpu.vector_store %arg12[%c0_41, %c0_42], %76 {strides = array<i32>} : memref<2x256xf32, #tpu.memory_space<vmem>>, vector<1x256xf32>,
    %c0_43 = arith.constant 0 : index
    %c1_44 = arith.constant 1 : index
    %78 = vector.load %arg10[%c0_43, %c1_44] : memref<32x2xf32, #tpu.memory_space<vmem>>, vector<32x1xf32>
    %79 = vector.broadcast %78 : vector<32x1xf32> to vector<32x256xf32>
    %80 = arith.mulf %79, %68 : vector<32x256xf32>
    %cst_45 = arith.constant dense<0.000000e+00> : vector<256xf32>
    %81 = vector.multi_reduction <add>, %80, %cst_45 [0] : vector<32x256xf32> to vector<256xf32>
    %82 = vector.shape_cast %81 : vector<256xf32> to vector<1x256xf32>
    %c1_46 = arith.constant 1 : index
    %c0_47 = arith.constant 0 : index
    %83 = vector.load %arg11[%c1_46, %c0_47] : memref<2x1xf32, #tpu.memory_space<vmem>>, vector<1x1xf32>
    %84 = vector.broadcast %83 : vector<1x1xf32> to vector<1x256xf32>
    %85 = arith.addf %82, %84 : vector<1x256xf32>
    %c1_48 = arith.constant 1 : index
    %c0_49 = arith.constant 0 : index
    %86 = vector.load %arg12[%c1_48, %c0_49] : memref<2x256xf32, #tpu.memory_space<vmem>>, vector<1x256xf32>
    tpu.vector_store %arg12[%c1_48, %c0_49], %85 {strides = array<i32>} : memref<2x256xf32, #tpu.memory_space<vmem>>, vector<1x256xf32>,
    return
  }
  func.func @transform_0(%arg0: i32) -> (i32, i32) {
    %c0_i32 = arith.constant 0 : i32
    %c0_i32_0 = arith.constant 0 : i32
    return %c0_i32, %arg0 : i32, i32
  }
  func.func @transform_1(%arg0: i32) -> (i32, i32) {
    %c0_i32 = arith.constant 0 : i32
    %c0_i32_0 = arith.constant 0 : i32
    %c0_i32_1 = arith.constant 0 : i32
    return %c0_i32, %c0_i32_0 : i32, i32
  }
  func.func @transform_2(%arg0: i32) -> (i32, i32) {
    %c0_i32 = arith.constant 0 : i32
    %c0_i32_0 = arith.constant 0 : i32
    %c0_i32_1 = arith.constant 0 : i32
    return %c0_i32, %c0_i32_0 : i32, i32
  }
  func.func @transform_3(%arg0: i32) -> (i32, i32) {
    %c0_i32 = arith.constant 0 : i32
    %c0_i32_0 = arith.constant 0 : i32
    %c0_i32_1 = arith.constant 0 : i32
    return %c0_i32, %c0_i32_0 : i32, i32
  }
  func.func @transform_4(%arg0: i32) -> (i32, i32) {
    %c0_i32 = arith.constant 0 : i32
    %c0_i32_0 = arith.constant 0 : i32
    %c0_i32_1 = arith.constant 0 : i32
    return %c0_i32, %c0_i32_0 : i32, i32
  }
  func.func @transform_5(%arg0: i32) -> (i32, i32) {
    %c0_i32 = arith.constant 0 : i32
    %c0_i32_0 = arith.constant 0 : i32
    %c0_i32_1 = arith.constant 0 : i32
    return %c0_i32, %c0_i32_0 : i32, i32
  }
  func.func @transform_6(%arg0: i32) -> (i32, i32) {
    %c0_i32 = arith.constant 0 : i32
    %c0_i32_0 = arith.constant 0 : i32
    %c0_i32_1 = arith.constant 0 : i32
    return %c0_i32, %c0_i32_0 : i32, i32
  }
  func.func @transform_7(%arg0: i32) -> (i32, i32) {
    %c0_i32 = arith.constant 0 : i32
    %c0_i32_0 = arith.constant 0 : i32
    %c0_i32_1 = arith.constant 0 : i32
    return %c0_i32, %c0_i32_0 : i32, i32
  }
  func.func @transform_8(%arg0: i32) -> (i32, i32) {
    %c0_i32 = arith.constant 0 : i32
    %c0_i32_0 = arith.constant 0 : i32
    %c0_i32_1 = arith.constant 0 : i32
    return %c0_i32, %c0_i32_0 : i32, i32
  }
  func.func @transform_9(%arg0: i32) -> (i32, i32) {
    %c0_i32 = arith.constant 0 : i32
    %c0_i32_0 = arith.constant 0 : i32
    %c0_i32_1 = arith.constant 0 : i32
    return %c0_i32, %c0_i32_0 : i32, i32
  }
  func.func @transform_10(%arg0: i32) -> (i32, i32) {
    %c0_i32 = arith.constant 0 : i32
    %c0_i32_0 = arith.constant 0 : i32
    %c0_i32_1 = arith.constant 0 : i32
    return %c0_i32, %c0_i32_0 : i32, i32
  }
  func.func @transform_11(%arg0: i32) -> (i32, i32) {
    %c0_i32 = arith.constant 0 : i32
    %c0_i32_0 = arith.constant 0 : i32
    return %c0_i32, %arg0 : i32, i32
  }
}

</mosaic_0001>

<bundles_post_ra>
// kernel: tpu_custom_call.1
= control target key start
LH: loop header
LB: loop body
LE: loop exit
PB: predicated region body
PF: predicated region fallthrough
CT: control target
= control target key end

     0   :  { %v1478_v1 = vmov 3   ;;  %v1479_v2 = vmov 1   ;;  %v1480_v4 = vmov 2   ;;  %s2176_s0 = inlined_call_operand.vmem [shape: f32[4,256], index: 0, kind: input, shape index: {}]   ;;  %s2177_s1 = inlined_call_operand.vmem [shape: f32[32,4], index: 1, kind: input, shape index: {}]   ;;  %s2178_s2 = inlined_call_operand.vmem [shape: f32[32,1], index: 2, kind: input, shape index: {}]   ;;  %s2179_s3 = inlined_call_operand.vmem [shape: f32[32,32], index: 3, kind: input, shape index: {}]   ;;  %s2180_s4 = inlined_call_operand.vmem [shape: f32[32,1], index: 4, kind: input, shape index: {}]   ;;  %s2181_s5 = inlined_call_operand.vmem [shape: f32[32,32], index: 5, kind: input, shape index: {}]   ;;  %s2182_s6 = inlined_call_operand.vmem [shape: f32[32,1], index: 6, kind: input, shape index: {}]   ;;  %s2183_s7 = inlined_call_operand.vmem [shape: f32[32,32], index: 7, kind: input, shape index: {}]   ;;  %s2184_s8 = inlined_call_operand.vmem [shape: f32[32,1], index: 8, kind: input, shape index: {}]   ;;  %s2185_s9 = inlined_call_operand.vmem [shape: f32[32,2], index: 9, kind: input, shape index: {}]   ;;  %s2186_s10 = inlined_call_operand.vmem [shape: f32[2,1], index: 10, kind: input, shape index: {}]   ;;  %s2187_s11 = inlined_call_operand.hbm [shape: f32[2,256], index: 11, kind: output, shape index: {}]  }
   0x1   :  { %v39_v0 = vld [vmem:[%s2177_s1] sm:$0xff]  ;;  %1313 = vset.pattern.permute.xlu0 %v1478_v1  ;;  %1309 = vset.pattern.permute.xlu1 %v1479_v2  ;;  %v40_v3 = vld [vmem:[%s2177_s1 + $0x8] sm:$0xff]  ;;  %v42_v5 = vld [vmem:[%s2177_s1 + $0x18] sm:$0xff] }
   0x2   :  { %176 = vperm.xlu0 %1313, %v39_v0   ;;  %86 = vperm.xlu1 %1309, %v39_v0  }
   0x6   :  { %1314 = vset.pattern.permute.xlu0 %v1480_v4  ;;  %90 = vperm.xlu1 %1309, %v40_v3  }
   0x7   :  { %131 = vperm.xlu0 %1314, %v39_v0  }
   0x8   :  { %16 = vsyncpa [#allocation3], 0  ;;  %v41_v6 = vld [vmem:[%s2177_s1 + $0x10] sm:$0xff]  ;;  %v1481_v7 = vmov 0   ;;  %v218_v8 = vld [vmem:[%s2178_s2] sm:$0xff]  ;;  %v1482_v25 = vmov 0.0   ;;  %v65_v26 = vlaneseq }
   0x9   :  { %v221_v9 = vld [vmem:[%s2178_s2 + $0x18] sm:$0xff]  ;;  %v367_v10 = vld [vmem:[%s2180_s4 + $0x8] sm:$0xff]  ;;  %v220_v16 = vld [vmem:[%s2178_s2 + $0x10] sm:$0xff]  ;;  %467 = vmatprep.mubr.f32.mxu0 %v1482_v25  ;;  %479 = vmatprep.mubr.f32.mxu1 %v1482_v25 }
   0xa   :  { %1310 = vset.pattern.permute.xlu1 %v1480_v4  ;;  %v369_v11 = vld [vmem:[%s2180_s4 + $0x18] sm:$0xff]  ;;  %v609_v12 = vld [vmem:[%s2182_s6 + $0x8] sm:$0xff]  ;;  %v366_v18 = vld [vmem:[%s2180_s4] sm:$0xff]  ;;  %v1618_v29 = vshrl.u32 %v65_v26, 7 }
   0xb   :  { %143 = vperm.xlu0 %1314, %v42_v5   ;;  %135 = vperm.xlu1 %1310, %v40_v3   ;;  %v611_v13 = vld [vmem:[%s2182_s6 + $0x18] sm:$0xff]  ;;  %v219_v14 = vld [vmem:[%s2178_s2 + $0x8] sm:$0xff]  ;;  %v368_v19 = vld [vmem:[%s2180_s4 + $0x10] sm:$0xff] }
   0xc   :  { %v850_v15 = vld [vmem:[%s2184_s8 + $0x8] sm:$0xff]  ;;  %v852_v17 = vld [vmem:[%s2184_s8 + $0x18] sm:$0xff]  ;;  %v608_v20 = vld [vmem:[%s2182_s6] sm:$0xff]  ;;  %v67_v32 = vsub.s32 0, %v1618_v29  ;;  %v71_v33 = vsub.s32 1, %v1618_v29 }
   0xd   :  { %v610_v21 = vld [vmem:[%s2182_s6 + $0x10] sm:$0xff]  ;;  %v849_v22 = vld [vmem:[%s2184_s8] sm:$0xff] }
   0xe   :  { %v851_v23 = vld [vmem:[%s2184_s8 + $0x10] sm:$0xff]  ;;  %v1086_v24 = vld [vmem:[%s2185_s9] sm:$0xff] }
   0xf   :  { %1317 = vset.pattern.permute.xlu0 %v1481_v7  ;;  %1311 = vset.pattern.permute.xlu1 %v1481_v7  ;;  %v1259_v34 = vld [vmem:[%s2176_s0 + $0x1] ss:$4 sm:$0x3]  ;;  %v43_v35 = vld [vmem:[%s2176_s0] ss:$4 sm:$0x3] }
  0x10   :  { %46 = vperm.xlu0 %1317, %v39_v0   ;;  %56 = vperm.xlu1 %1311, %v41_v6   ;;  %v105_v38 = vrot.slane %v1259_v34, %v67_v32  ;;  %v109_v39 = vrot.slane %v1259_v34, %v71_v33  ;;  %v1260_v40 = vld [vmem:[%s2176_s0 + $0x2] ss:$4 sm:$0x3]  ;;  %v68_v41 = vrot.slane %v43_v35, %v67_v32  ;;  %v1261_v43 = vld [vmem:[%s2176_s0 + $0x3] ss:$4 sm:$0x3] }
  0x11   :  { %v72_v42 = vrot.slane %v43_v35, %v71_v33  ;;  %v150_v44 = vrot.slane %v1260_v40, %v67_v32  ;;  %v1634_v45 = vrot.slane %v1260_v40, %v71_v33  ;;  %v1636_v52 = vrot.slane %v1261_v43, %v67_v32 }
  0x12   :  { %v1638_v53 = vrot.slane %v1261_v43, %v71_v33 }
  0x14   :  { %51 = vperm.xlu0 %1317, %v40_v3   ;;  %1312 = vset.pattern.permute.xlu1 %v1479_v2 }
  0x15   :  { %94 = vperm.xlu1 %1312, %v41_v6  }
  0x18   :  { %61 = vperm.xlu0 %1317, %v42_v5  }
  0x19   :  { %98 = vperm.xlu1 %1312, %v42_v5  }
  0x1c   :  { %224 = vperm.xlu0 %1317, %v218_v8  }
  0x1d   :  { %1315 = vset.pattern.permute.xlu1 %v1478_v1 }
  0x1e   :  { %180 = vperm.xlu1 %1315, %v40_v3  }
  0x20   :  { %239 = vperm.xlu0 %1317, %v221_v9  }
  0x22   :  { %1316 = vset.pattern.permute.xlu1 %v1480_v4 }
  0x23   :  { %139 = vperm.xlu1 %1316, %v41_v6  }
  0x24   :  { %377 = vperm.xlu0 %1317, %v367_v10  }
  0x27   :  { %1318 = vset.pattern.permute.xlu1 %v1478_v1 }
  0x28   :  { %387 = vperm.xlu0 %1317, %v369_v11   ;;  %184 = vperm.xlu1 %1318, %v41_v6  }
  0x2c   :  { %619 = vperm.xlu0 %1317, %v609_v12   ;;  %188 = vperm.xlu1 %1318, %v42_v5  }
  0x30   :  { %629 = vperm.xlu0 %1317, %v611_v13   ;;  %1319 = vset.pattern.permute.xlu1 %v1481_v7 }
  0x31   :  { %229 = vperm.xlu1 %1319, %v219_v14  }
  0x34   :  { %860 = vperm.xlu0 %1317, %v850_v15  }
  0x35   :  { %234 = vperm.xlu1 %1319, %v220_v16  }
  0x38   :  { %870 = vperm.xlu0 %1317, %v852_v17  }
  0x39   :  { %372 = vperm.xlu1 %1319, %v366_v18  }
  0x3c   :  { %1321 = vset.pattern.permute.xlu0 %v1479_v2 }
  0x3d   :  { %382 = vperm.xlu1 %1319, %v368_v19  }
  0x41   :  { %614 = vperm.xlu1 %1319, %v608_v20  }
  0x45   :  { %624 = vperm.xlu1 %1319, %v610_v21  }
  0x49   :  { %855 = vperm.xlu1 %1319, %v849_v22  }
  0x4d   :  { %865 = vperm.xlu1 %1319, %v851_v23  }
  0x51   :  { %1092 = vperm.xlu1 %1319, %v1086_v24  }
  0x55   :  { %1320 = vset.pattern.permute.xlu1 %v1479_v2 }
  0x81   :  { %v87_v27 = vpop.permute.xlu1 %86  ;;  %v177_v28 = vpop.permute.xlu0 %176 }
  0x82   :  { %v112_v48 = vmul.f32 %v105_v38, %v87_v27  ;;  %v113_v49 = vmul.f32 %v109_v39, %v87_v27  ;;  %v202_v60 = vmul.f32 %v1636_v52, %v177_v28  ;;  %v203_v61 = vmul.f32 %v1638_v53, %v177_v28 }
  0x85   :  { %v91_v30 = vpop.permute.xlu1 %90 }
  0x86   :  { %v132_v31 = vpop.permute.xlu0 %131  ;;  %v114_v21 = vmul.f32 %v105_v38, %v91_v30  ;;  %v115_v22 = vmul.f32 %v109_v39, %v91_v30 }
  0x87   :  { %v157_v54 = vmul.f32 %v150_v44, %v132_v31  ;;  %v158_v55 = vmul.f32 %v1634_v45, %v132_v31 }
  0x8a   :  { %v136_v36 = vpop.permute.xlu1 %135  ;;  %v144_v37 = vpop.permute.xlu0 %143 }
  0x8b   :  { %v163_v23 = vmul.f32 %v150_v44, %v144_v37  ;;  %v164_v28 = vmul.f32 %v1634_v45, %v144_v37  ;;  %v159_v35 = vmul.f32 %v150_v44, %v136_v36  ;;  %v160_v40 = vmul.f32 %v1634_v45, %v136_v36 }
  0x8f   :  { %v47_v46 = vpop.permute.xlu0 %46  ;;  %v57_v47 = vpop.permute.xlu1 %56 }
  0x90   :  { %v75_v50 = vmul.f32 %v68_v41, %v47_v46  ;;  %v76_v51 = vmul.f32 %v72_v42, %v47_v46  ;;  %v79_v43 = vmul.f32 %v68_v41, %v57_v47 }
  0x92   :  { %v120_v56 = vadd.f32 %v112_v48, %v75_v50  ;;  %v121_v57 = vadd.f32 %v113_v49, %v76_v51  ;;  %v80_v48 = vmul.f32 %v72_v42, %v57_v47 }
  0x93   :  { %v52_v58 = vpop.permute.xlu0 %51 }
  0x94   :  { %v95_v59 = vpop.permute.xlu1 %94  ;;  %v165_v62 = vadd.f32 %v157_v54, %v120_v56  ;;  %v166_v63 = vadd.f32 %v158_v55, %v121_v57  ;;  %v77_v19 = vmul.f32 %v68_v41, %v52_v58  ;;  %v78_v20 = vmul.f32 %v72_v42, %v52_v58 }
  0x95   :  { %v116_v34 = vmul.f32 %v105_v38, %v95_v59  ;;  %v117_v46 = vmul.f32 %v109_v39, %v95_v59 }
  0x96   :  { %v210_v3 = vadd.f32 %v202_v60, %v165_v62  ;;  %v211_v4 = vadd.f32 %v203_v61, %v166_v63  ;;  %v122_v32 = vadd.f32 %v114_v21, %v77_v19  ;;  %v123_v33 = vadd.f32 %v115_v22, %v78_v20 }
  0x97   :  { %v62_v0 = vpop.permute.xlu0 %61  ;;  %v124_v36 = vadd.f32 %v116_v34, %v79_v43  ;;  %v125_v47 = vadd.f32 %v117_v46, %v80_v48 }
  0x98   :  { %v99_v1 = vpop.permute.xlu1 %98  ;;  %v81_v15 = vmul.f32 %v68_v41, %v62_v0  ;;  %v82_v17 = vmul.f32 %v72_v42, %v62_v0  ;;  %v167_v41 = vadd.f32 %v159_v35, %v122_v32  ;;  %v168_v42 = vadd.f32 %v160_v40, %v123_v33 }
  0x99   :  { %v118_v16 = vmul.f32 %v105_v38, %v99_v1  ;;  %v119_v18 = vmul.f32 %v109_v39, %v99_v1 }
  0x9b   :  { %v225_v5 = vpop.permute.xlu0 %224  ;;  %v126_v24 = vadd.f32 %v118_v16, %v81_v15  ;;  %v127_v31 = vadd.f32 %v119_v18, %v82_v17 }
  0x9c   :  { %v1643_v6 = vadd.f32 %v225_v5, %v210_v3  ;;  %v1645_v8 = vadd.f32 %v225_v5, %v211_v4 }
  0x9d   :  { %v181_v9 = vpop.permute.xlu1 %180  ;;  %v171_v30 = vadd.f32 %v163_v23, %v126_v24  ;;  %v172_v37 = vadd.f32 %v164_v28, %v127_v31 }
  0x9e   :  { %v250_v10 = vmin.f32 %v1643_v6, 20.0  ;;  %v251_v11 = vmin.f32 %v1645_v8, 20.0  ;;  %v204_v49 = vmul.f32 %v1636_v52, %v181_v9  ;;  %v205_v50 = vmul.f32 %v1638_v53, %v181_v9 }
  0x9f   :  { %v240_v61 = vpop.permute.xlu0 %239  ;;  %vm259_vm0 = vcmp.gt.f32.partialorder %v1645_v8, 20.0  ;;  %vm258_vm4 = vcmp.gt.f32.partialorder %v1643_v6, 20.0 }
  0xa0   :  { %v266_v12 = vmul.f32 1.442695, %v250_v10  ;;  %v268_v13 = vmul.f32 1.442695, %v251_v11  ;;  %v212_v62 = vadd.f32 %v204_v49, %v167_v41  ;;  %v213_v63 = vadd.f32 %v205_v50, %v168_v42 }
  0xa2   :  { %1326 = vpow2.f32 %v266_v12  ;;  %v140_v14 = vpop.permute.xlu1 %139 }
  0xa3   :  { %1328 = vpow2.f32 %v268_v13  ;;  %v161_v55 = vmul.f32 %v150_v44, %v140_v14  ;;  %v162_v39 = vmul.f32 %v1634_v45, %v140_v14 }
  0xa5   :  { %v169_v1 = vadd.f32 %v161_v55, %v124_v36  ;;  %v170_v9 = vadd.f32 %v162_v39, %v125_v47 }
  0xa7   :  { %v185_v27 = vpop.permute.xlu1 %184 }
  0xa8   :  { %v206_v58 = vmul.f32 %v1636_v52, %v185_v27  ;;  %v207_v44 = vmul.f32 %v1638_v53, %v185_v27 }
  0xaa   :  { %v214_v12 = vadd.f32 %v206_v58, %v169_v1  ;;  %v215_v15 = vadd.f32 %v207_v44, %v170_v9 }
  0xab   :  { %v189_v51 = vpop.permute.xlu1 %188 }
  0xac   :  { %v1653_v54 = vpop.eup %1326  ;;  %v208_v56 = vmul.f32 %v1636_v52, %v189_v51  ;;  %v209_v38 = vmul.f32 %v1638_v53, %v189_v51 }
  0xad   :  { %v1657_v57 = vpop.eup %1328  ;;  %v282_v0 = vadd.f32 1.0, %v1653_v54  ;;  %v285_v33 = vmul.f32 -0.5, %v1653_v54 }
  0xae   :  { %v216_v59 = vadd.f32 %v208_v56, %v171_v30  ;;  %v217_v60 = vadd.f32 %v209_v38, %v172_v37  ;;  %v291_v5 = vadd.f32 1.0, %v1657_v57  ;;  %v294_v35 = vmul.f32 -0.5, %v1657_v57 }
  0xaf   :  { %1330 = vlog2.f32 %v282_v0  ;;  %v286_v50 = vadd.f32 1.0, %v285_v33  ;;  %v297_v56 = vand.u32 2147483647, %v1657_v57  ;;  %v288_v38 = vand.u32 2147483647, %v1653_v54 }
  0xb0   :  { %v1663_v3 = vadd.f32 %v240_v61, %v216_v59  ;;  %v1665_v4 = vadd.f32 %v240_v61, %v217_v60  ;;  %v230_v45 = vpop.permute.xlu1 %229  ;;  %1332 = vlog2.f32 %v291_v5  ;;  %v295_v51 = vadd.f32 1.0, %v294_v35 }
  0xb1   :  { %v1668_v10 = vadd.f32 %v230_v45, %v212_v62  ;;  %v1670_v52 = vadd.f32 %v230_v45, %v213_v63  ;;  %v287_v42 = vmul.f32 %v1653_v54, %v286_v50  ;;  %vm1698_vm1 = vcmp.lt.f32.partialorder %v297_v56, 0.0004427343 }
  0xb2   :  { %v256_v11 = vmin.f32 %v1663_v3, 20.0  ;;  %v257_v53 = vmin.f32 %v1665_v4, 20.0  ;;  %v296_v58 = vmul.f32 %v1657_v57, %v295_v51  ;;  %vm1702_vm2 = vcmp.lt.f32.partialorder %v288_v38, 0.0004427343 }
  0xb3   :  { %v252_v13 = vmin.f32 %v1668_v10, 20.0  ;;  %v253_v14 = vmin.f32 %v1670_v52, 20.0  ;;  %vm261_vm3 = vcmp.gt.f32.partialorder %v1670_v52, 20.0  ;;  %vm260_vm5 = vcmp.gt.f32.partialorder %v1668_v10, 20.0 }
  0xb4   :  { %v278_v16 = vmul.f32 1.442695, %v256_v11  ;;  %v280_v17 = vmul.f32 1.442695, %v257_v53  ;;  %v235_v18 = vpop.permute.xlu1 %234  ;;  %vm265_vm7 = vcmp.gt.f32.partialorder %v1665_v4, 20.0  ;;  %vm264_vm13 = vcmp.gt.f32.partialorder %v1663_v3, 20.0 }
  0xb5   :  { %v270_v19 = vmul.f32 1.442695, %v252_v13  ;;  %v272_v20 = vmul.f32 1.442695, %v253_v14  ;;  %v1676_v21 = vadd.f32 %v235_v18, %v214_v12  ;;  %v1678_v22 = vadd.f32 %v235_v18, %v215_v15 }
  0xb6   :  { %1334 = vpow2.f32 %v278_v16 }
  0xb7   :  { %1336 = vpow2.f32 %v280_v17  ;;  %v254_v23 = vmin.f32 %v1676_v21, 20.0  ;;  %v255_v24 = vmin.f32 %v1678_v22, 20.0  ;;  %vm263_vm12 = vcmp.gt.f32.partialorder %v1678_v22, 20.0 }
  0xb8   :  { %1338 = vpow2.f32 %v270_v19  ;;  %vm262_vm15 = vcmp.gt.f32.partialorder %v1676_v21, 20.0 }
  0xb9   :  { %1340 = vpow2.f32 %v272_v20  ;;  %v274_v27 = vmul.f32 1.442695, %v254_v23  ;;  %v276_v28 = vmul.f32 1.442695, %v255_v24  ;;  %v1331_v31 = vpop.eup %1330 }
  0xba   :  { %v1333_v32 = vpop.eup %1332  ;;  %v284_v41 = vmul.f32 0.6931472, %v1331_v31 }
  0xbb   :  { %1342 = vpow2.f32 %v274_v27  ;;  %v293_v39 = vmul.f32 0.6931472, %v1333_v32 }
  0xbc   :  { %1344 = vpow2.f32 %v276_v28  ;;  %v290_v57 = vsel %vm1702_vm2, %v287_v42, %v284_v41 }
  0xbd   :  { %v299_v54 = vsel %vm1698_vm1, %v296_v58, %v293_v39  ;;  %v354_v13 = vsel %vm258_vm4, %v1643_v6, %v290_v57 }
  0xbe   :  { %v355_v17 = vsel %vm259_vm0, %v1645_v8, %v299_v54  ;;  %vm390_vm0 = vcmask 261120  }
  0xc0   :  { %v1683_v34 = vpop.eup %1334 }
  0xc1   :  { %v1686_v40 = vpop.eup %1336  ;;  %v336_v43 = vadd.f32 1.0, %v1683_v34  ;;  %v339_v9 = vmul.f32 -0.5, %v1683_v34  ;;  %v342_v20 = vand.u32 2147483647, %v1683_v34 }
  0xc2   :  { %v1339_v46 = vpop.eup %1338  ;;  %v345_v48 = vadd.f32 1.0, %v1686_v40  ;;  %v348_v63 = vmul.f32 -0.5, %v1686_v40  ;;  %v351_v5 = vand.u32 2147483647, %v1686_v40 }
  0xc3   :  { %v1341_v49 = vpop.eup %1340  ;;  %v300_v30 = vadd.f32 1.0, %v1339_v46  ;;  %1346 = vlog2.f32 %v336_v43  ;;  %v303_v60 = vmul.f32 -0.5, %v1339_v46  ;;  %v306_v0 = vand.u32 2147483647, %v1339_v46 }
  0xc4   :  { %v309_v55 = vadd.f32 1.0, %v1341_v49  ;;  %1348 = vlog2.f32 %v345_v48  ;;  %v312_v59 = vmul.f32 -0.5, %v1341_v49  ;;  %v315_v1 = vand.u32 2147483647, %v1341_v49 }
  0xc5   :  { %v1690_v37 = vpop.eup %1342  ;;  %1350 = vlog2.f32 %v300_v30  ;;  %v304_v53 = vadd.f32 1.0, %v303_v60  ;;  %v349_v14 = vadd.f32 1.0, %v348_v63  ;;  %vm1721_vm6 = vcmp.lt.f32.partialorder %v306_v0, 0.0004427343 }
  0xc6   :  { %v1345_v36 = vpop.eup %1344  ;;  %1352 = vlog2.f32 %v309_v55  ;;  %v318_v61 = vadd.f32 1.0, %v1690_v37  ;;  %v313_v11 = vadd.f32 1.0, %v312_v59  ;;  %v321_v15 = vmul.f32 -0.5, %v1690_v37 }
  0xc7   :  { %v327_v47 = vadd.f32 1.0, %v1345_v36  ;;  %v330_v45 = vmul.f32 -0.5, %v1345_v36  ;;  %v333_v19 = vand.u32 2147483647, %v1345_v36  ;;  %vm1727_vm8 = vcmp.lt.f32.partialorder %v315_v1, 0.0004427343  ;;  %v373_v1 = vpop.permute.xlu1 %372 }
  0xc8   :  { %vm1731_vm9 = vcmp.lt.f32.partialorder %v351_v5, 0.0004427343  ;;  %v340_v8 = vadd.f32 1.0, %v339_v9  ;;  %v314_v31 = vmul.f32 %v1341_v49, %v313_v11  ;;  %v305_v33 = vmul.f32 %v1339_v46, %v304_v53 }
  0xc9   :  { %1354 = vlog2.f32 %v327_v47  ;;  %v331_v24 = vadd.f32 1.0, %v330_v45  ;;  %v350_v48 = vmul.f32 %v1686_v40, %v349_v14  ;;  %v322_v50 = vadd.f32 1.0, %v321_v15  ;;  %v378_v45 = vpop.permute.xlu0 %377 }
  0xca   :  { %1356 = vlog2.f32 %v318_v61  ;;  %vm1738_vm10 = vcmp.lt.f32.partialorder %v333_v19, 0.0004427343  ;;  %v324_v56 = vand.u32 2147483647, %v1690_v37  ;;  %vm1743_vm11 = vcmp.lt.f32.partialorder %v342_v20, 0.0004427343 }
  0xcb   :  { %v332_v39 = vmul.f32 %v1345_v36, %v331_v24  ;;  %v341_v41 = vmul.f32 %v1683_v34, %v340_v8  ;;  %v323_v62 = vmul.f32 %v1690_v37, %v322_v50  ;;  %v383_v5 = vpop.permute.xlu1 %382 }
  0xcc   :  { %vm325_vm14 = vcmp.lt.f32.partialorder %v324_v56, 0.0004427343 }
  0xcd   :  { %v1347_v12 = vpop.eup %1346 }
  0xce   :  { %v1349_v16 = vpop.eup %1348  ;;  %v338_v30 = vmul.f32 0.6931472, %v1347_v12 }
  0xcf   :  { %v1351_v23 = vpop.eup %1350  ;;  %v347_v35 = vmul.f32 0.6931472, %v1349_v16  ;;  %v388_v16 = vpop.permute.xlu0 %387 }
  0xd0   :  { %v1353_v28 = vpop.eup %1352  ;;  %v302_v32 = vmul.f32 0.6931472, %v1351_v23 }
  0xd1   :  { %v311_v43 = vmul.f32 0.6931472, %v1353_v28  ;;  %v353_v60 = vsel %vm1731_vm9, %v350_v48, %v347_v35 }
  0xd2   :  { %v308_v51 = vsel %vm1721_vm6, %v305_v33, %v302_v32  ;;  %v361_v37 = vsel %vm265_vm7, %v1665_v4, %v353_v60  ;;  %v364_v4 = vld [vmem:[%s2179_s3 + $0x10] sm:$0xff] }
  0xd3   :  { %v1355_v46 = vpop.eup %1354  ;;  %v317_v49 = vsel %vm1727_vm8, %v314_v31, %v311_v43  ;;  %v356_v40 = vsel %vm260_vm5, %v1668_v10, %v308_v51  ;;  %v344_v10 = vsel %vm1743_vm11, %v341_v41, %v338_v30 }
  0xd4   :  { %v1357_v42 = vpop.eup %1356  ;;  %v357_v47 = vsel %vm261_vm3, %v1670_v52, %v317_v49  ;;  %v1276_v58 = vpack.c.bf16 %v356_v40, %v354_v13  ;;  %v329_v59 = vmul.f32 0.6931472, %v1355_v46  ;;  %v360_v57 = vsel %vm264_vm13, %v1663_v3, %v344_v10  ;;  %v363_v3 = vld [vmem:[%s2179_s3 + $0x8] sm:$0xff] }
  0xd5   :  { %v1274_v61 = vpack.c.bf16 %v357_v47, %v355_v17  ;;  %v320_v44 = vmul.f32 0.6931472, %v1357_v42 }
  0xd6   :  { %v335_v34 = vsel %vm1738_vm10, %v332_v39, %v329_v59 }
  0xd7   :  { %1275 = vmatprep.subr.bf16.mxu0 %v1274_v61  ;;  %1298 = vmatprep.subr.bf16.mxu1 %v1274_v61  ;;  %v359_v52 = vsel %vm263_vm12, %v1678_v22, %v335_v34  ;;  %v326_v36 = vsel %vm325_vm14, %v323_v62, %v320_v44  ;;  %v362_v22 = vld [vmem:[%s2179_s3] sm:$0xff] }
  0xd8   :  { %1277 = vmatpush1.bf16.msra.mxu0 %v1276_v58  ;;  %1300 = vmatpush1.bf16.msra.mxu1 %v1276_v58  ;;  %v1278_v63 = vpack.c.bf16 %v361_v37, %v359_v52  ;;  %v358_v54 = vsel %vm262_vm15, %v1676_v21, %v326_v36  ;;  %v365_v21 = vld [vmem:[%s2179_s3 + $0x18] sm:$0xff] }
  0xd9   :  { %v1280_v0 = vpack.c.bf16 %v360_v57, %v358_v54 }
  0xda   :  { %1279 = vmatprep.subr.bf16.mxu0 %v1278_v63  ;;  %1299 = vmatprep.subr.bf16.mxu1 %v1278_v63 }
  0xdc   :  { %1281 = vmatpush1.bf16.msra.mxu0 %v1280_v0  ;;  %1301 = vmatpush1.bf16.msra.mxu1 %v1280_v0 }
  0xdf   :  { %1262 = vmatmul.mubr.msk.f32.vlgmr.msra.gmra.mrb[0].mxu0 %vm390_vm0, %v362_v22  ;;  %1264 = vmatmul.mubr.msk.f32.vlgmr.msra.gmra.mrb[0].mxu1 %vm390_vm0, %v364_v4 }
  0xe0   :  { %473 = vmatprep.mubr.f32.mxu0 %v1482_v25  ;;  %485 = vmatprep.mubr.f32.mxu1 %v1482_v25 }
  0xe3   :  { %1263 = vmatmul.mubr.msk.f32.gmra.mrb[2].mxu0 %vm390_vm0, %v363_v3  ;;  %1265 = vmatmul.mubr.msk.f32.gmra.mrb[2].mxu1 %vm390_vm0, %v365_v21 }
  0xe4   :  { %708 = vmatprep.mubr.f32.mxu1 %v1482_v25  ;;  %949 = vmatprep.mubr.f32.mxu0 %v1482_v25 }
 0x1b2   :  { %v469_v9 = vpop.f32.mrb[0].mxu0  ;;  %v481_v11 = vpop.f32.mrb[0].mxu1 }
 0x1b3   :  { %v1792_v53 = vadd.f32 %v469_v9, %v373_v1  ;;  %v1794_v12 = vadd.f32 %v481_v11, %v383_v5  ;;  %v471_v13 = vpop.f32.mrb[1].mxu0  ;;  %v483_v14 = vpop.f32.mrb[1].mxu1 }
 0x1b4   :  { %v1796_v15 = vadd.f32 %v471_v13, %v373_v1  ;;  %v1800_v19 = vadd.f32 %v483_v14, %v383_v5 }
 0x1b5   :  { %v492_v17 = vmin.f32 %v1792_v53, 20.0  ;;  %v496_v18 = vmin.f32 %v1794_v12, 20.0  ;;  %vm500_vm2 = vcmp.gt.f32.partialorder %v1792_v53, 20.0  ;;  %vm504_vm3 = vcmp.gt.f32.partialorder %v1794_v12, 20.0 }
 0x1b6   :  { %v493_v20 = vmin.f32 %v1796_v15, 20.0  ;;  %v475_v23 = vpop.f32.mrb[2].mxu0  ;;  %v487_v6 = vpop.f32.mrb[2].mxu1  ;;  %v497_v48 = vmin.f32 %v1800_v19, 20.0  ;;  %vm501_vm10 = vcmp.gt.f32.partialorder %v1796_v15, 20.0  ;;  %vm505_vm15 = vcmp.gt.f32.partialorder %v1800_v19, 20.0 }
 0x1b7   :  { %v508_v24 = vmul.f32 1.442695, %v492_v17  ;;  %v516_v27 = vmul.f32 1.442695, %v496_v18  ;;  %v1803_v8 = vadd.f32 %v475_v23, %v378_v45  ;;  %v1805_v28 = vadd.f32 %v487_v6, %v388_v16  ;;  %v477_v31 = vpop.f32.mrb[3].mxu0  ;;  %v489_v32 = vpop.f32.mrb[3].mxu1 }
 0x1b8   :  { %v510_v33 = vmul.f32 1.442695, %v493_v20  ;;  %v1807_v35 = vadd.f32 %v477_v31, %v378_v45  ;;  %v1809_v43 = vadd.f32 %v489_v32, %v388_v16  ;;  %v518_v49 = vmul.f32 1.442695, %v497_v48 }
 0x1b9   :  { %1358 = vpow2.f32 %v508_v24  ;;  %v494_v50 = vmin.f32 %v1803_v8, 20.0  ;;  %v498_v30 = vmin.f32 %v1805_v28, 20.0  ;;  %vm502_vm4 = vcmp.gt.f32.partialorder %v1803_v8, 20.0  ;;  %v1088_v24 = vld [vmem:[%s2185_s9 + $0x10] sm:$0xff] }
 0x1ba   :  { %1360 = vpow2.f32 %v516_v27  ;;  %v495_v51 = vmin.f32 %v1807_v35, 20.0  ;;  %v499_v38 = vmin.f32 %v1809_v43, 20.0  ;;  %vm506_vm5 = vcmp.gt.f32.partialorder %v1805_v28, 20.0 }
 0x1bb   :  { %1362 = vpow2.f32 %v510_v33  ;;  %v512_v55 = vmul.f32 1.442695, %v494_v50  ;;  %v520_v56 = vmul.f32 1.442695, %v498_v30  ;;  %vm503_vm11 = vcmp.gt.f32.partialorder %v1807_v35, 20.0 }
 0x1bc   :  { %v514_v46 = vmul.f32 1.442695, %v495_v51  ;;  %v522_v40 = vmul.f32 1.442695, %v499_v38 }
 0x1bd   :  { %1364 = vpow2.f32 %v512_v55 }
 0x1be   :  { %1366 = vpow2.f32 %v520_v56 }
 0x1bf   :  { %1368 = vpow2.f32 %v514_v46 }
 0x1c0   :  { %1370 = vpow2.f32 %v518_v49 }
 0x1c1   :  { %1372 = vpow2.f32 %v522_v40 }
 0x1c3   :  { %v1359_v39 = vpop.eup %1358 }
 0x1c4   :  { %v1361_v41 = vpop.eup %1360  ;;  %v524_v42 = vadd.f32 1.0, %v1359_v39  ;;  %v527_v10 = vmul.f32 -0.5, %v1359_v39  ;;  %v530_v34 = vand.u32 2147483647, %v1359_v39 }
 0x1c5   :  { %v1363_v47 = vpop.eup %1362  ;;  %v560_v58 = vadd.f32 1.0, %v1361_v41  ;;  %v563_v37 = vmul.f32 -0.5, %v1361_v41  ;;  %v566_v3 = vand.u32 2147483647, %v1361_v41 }
 0x1c6   :  { %1374 = vlog2.f32 %v524_v42  ;;  %v533_v44 = vadd.f32 1.0, %v1363_v47  ;;  %v536_v57 = vmul.f32 -0.5, %v1363_v47  ;;  %v528_v22 = vadd.f32 1.0, %v527_v10 }
 0x1c7   :  { %v1365_v59 = vpop.eup %1364  ;;  %1376 = vlog2.f32 %v560_v58  ;;  %vm1823_vm1 = vcmp.lt.f32.partialorder %v530_v34, 0.0004427343  ;;  %v564_v21 = vadd.f32 1.0, %v563_v37  ;;  %v539_v18 = vand.u32 2147483647, %v1363_v47 }
 0x1c8   :  { %v1367_v60 = vpop.eup %1366  ;;  %v542_v61 = vadd.f32 1.0, %v1365_v59  ;;  %v545_v54 = vmul.f32 -0.5, %v1365_v59  ;;  %v548_v5 = vand.u32 2147483647, %v1365_v59  ;;  %v537_v17 = vadd.f32 1.0, %v536_v57 }
 0x1c9   :  { %v1816_v62 = vpop.eup %1368  ;;  %v578_v52 = vadd.f32 1.0, %v1367_v60  ;;  %v581_v1 = vmul.f32 -0.5, %v1367_v60  ;;  %v584_v9 = vand.u32 2147483647, %v1367_v60  ;;  %v529_v6 = vmul.f32 %v1359_v39, %v528_v22 }
 0x1ca   :  { %1378 = vlog2.f32 %v542_v61  ;;  %v1818_v36 = vpop.eup %1370  ;;  %v551_v0 = vadd.f32 1.0, %v1816_v62  ;;  %v554_v11 = vmul.f32 -0.5, %v1816_v62  ;;  %v546_v16 = vadd.f32 1.0, %v545_v54 }
 0x1cb   :  { %1380 = vlog2.f32 %v578_v52  ;;  %v1820_v63 = vpop.eup %1372  ;;  %v569_v45 = vadd.f32 1.0, %v1818_v36  ;;  %vm1834_vm6 = vcmp.lt.f32.partialorder %v566_v3, 0.0004427343  ;;  %v565_v31 = vmul.f32 %v1361_v41, %v564_v21 }
 0x1cc   :  { %1382 = vlog2.f32 %v533_v44  ;;  %v587_v13 = vadd.f32 1.0, %v1820_v63  ;;  %v582_v32 = vadd.f32 1.0, %v581_v1  ;;  %v572_v33 = vmul.f32 -0.5, %v1818_v36 }
 0x1cd   :  { %1384 = vlog2.f32 %v551_v0  ;;  %vm1839_vm7 = vcmp.lt.f32.partialorder %v548_v5, 0.0004427343  ;;  %vm1843_vm8 = vcmp.lt.f32.partialorder %v584_v9, 0.0004427343  ;;  %v555_v30 = vadd.f32 1.0, %v554_v11 }
 0x1ce   :  { %1386 = vlog2.f32 %v569_v45  ;;  %v590_v51 = vmul.f32 -0.5, %v1820_v63  ;;  %v547_v56 = vmul.f32 %v1365_v59, %v546_v16  ;;  %v538_v38 = vmul.f32 %v1363_v47, %v537_v17 }
 0x1cf   :  { %1388 = vlog2.f32 %v587_v13  ;;  %vm1848_vm9 = vcmp.lt.f32.partialorder %v539_v18, 0.0004427343  ;;  %v557_v49 = vand.u32 2147483647, %v1816_v62  ;;  %v575_v58 = vand.u32 2147483647, %v1818_v36 }
 0x1d0   :  { %v1375_v14 = vpop.eup %1374  ;;  %v583_v59 = vmul.f32 %v1367_v60, %v582_v32  ;;  %v573_v47 = vadd.f32 1.0, %v572_v33  ;;  %v593_v10 = vand.u32 2147483647, %v1820_v63  ;;  %v556_v37 = vmul.f32 %v1816_v62, %v555_v30  ;;  %v1136_v32 = vld [vmem:[%s2186_s10] sm:$0x1]  ;;  %v615_v33 = vpop.permute.xlu1 %614 }
 0x1d1   :  { %v1377_v20 = vpop.eup %1376  ;;  %v526_v23 = vmul.f32 0.6931472, %v1375_v14  ;;  %v591_v54 = vadd.f32 1.0, %v590_v51  ;;  %vm558_vm12 = vcmp.lt.f32.partialorder %v557_v49, 0.0004427343 }
 0x1d2   :  { %v562_v27 = vmul.f32 0.6931472, %v1377_v20  ;;  %v574_v9 = vmul.f32 %v1818_v36, %v573_v47  ;;  %vm576_vm13 = vcmp.lt.f32.partialorder %v575_v58, 0.0004427343  ;;  %vm594_vm14 = vcmp.lt.f32.partialorder %v593_v10, 0.0004427343 }
 0x1d3   :  { %v532_v39 = vsel %vm1823_vm1, %v529_v6, %v526_v23  ;;  %v592_v14 = vmul.f32 %v1820_v63, %v591_v54  ;;  %vm507_vm1 = vcmp.gt.f32.partialorder %v1809_v43, 20.0  ;;  %v605_v63 = vld [vmem:[%s2181_s5 + $0x8] sm:$0xff]  ;;  %v1167_v23 = vld [vmem:[%s2185_s9] sm:$0xff] }
 0x1d4   :  { %v1379_v55 = vpop.eup %1378  ;;  %v568_v41 = vsel %vm1834_vm6, %v565_v31, %v562_v27  ;;  %v596_v0 = vsel %vm500_vm2, %v1792_v53, %v532_v39  ;;  %v1168_v6 = vld [vmem:[%s2185_s9 + $0x8] sm:$0xff]  ;;  %1173 = vperm.xlu1 %1320, %v1167_v23   ;;  %v1089_v27 = vld [vmem:[%s2185_s9 + $0x18] sm:$0xff]  ;;  %v1217_v31 = vld [vmem:[%s2186_s10 + $0x1] sm:$0x1] }
 0x1d5   :  { %v1381_v40 = vpop.eup %1380  ;;  %v544_v42 = vmul.f32 0.6931472, %v1379_v55  ;;  %v600_v22 = vsel %vm504_vm3, %v1794_v12, %v568_v41  ;;  %1178 = vperm.xlu0 %1321, %v1168_v6   ;;  %v620_v55 = vpop.permute.xlu0 %619 }
 0x1d6   :  { %v1383_v61 = vpop.eup %1382  ;;  %v580_v44 = vmul.f32 0.6931472, %v1381_v40 }
 0x1d7   :  { %v550_v34 = vsel %vm1839_vm7, %v547_v56, %v544_v42  ;;  %v535_v52 = vmul.f32 0.6931472, %v1383_v61  ;;  %v1385_v57 = vpop.eup %1384  ;;  %v625_v42 = vpop.permute.xlu1 %624 }
 0x1d8   :  { %v598_v60 = vsel %vm502_vm4, %v1803_v8, %v550_v34  ;;  %v586_v4 = vsel %vm1843_vm8, %v583_v59, %v580_v44  ;;  %v553_v53 = vmul.f32 0.6931472, %v1385_v57  ;;  %v1387_v1 = vpop.eup %1386  ;;  %1323 = vset.pattern.permute.xlu1 %v1481_v7 }
 0x1d9   :  { %v1284_v3 = vpack.c.bf16 %v598_v60, %v596_v0  ;;  %v602_v62 = vsel %vm506_vm5, %v1805_v28, %v586_v4  ;;  %v541_v21 = vsel %vm1848_vm9, %v538_v38, %v535_v52  ;;  %v1389_v8 = vpop.eup %1388  ;;  %v571_v5 = vmul.f32 0.6931472, %v1387_v1  ;;  %1322 = vset.pattern.permute.xlu0 %v1481_v7  ;;  %1102 = vperm.xlu1 %1323, %v1088_v24  }
 0x1da   :  { %v1288_v12 = vpack.c.bf16 %v602_v62, %v600_v22  ;;  %v559_v45 = vsel %vm558_vm12, %v556_v37, %v553_v53  ;;  %v597_v11 = vsel %vm501_vm10, %v1796_v15, %v541_v21  ;;  %v589_v13 = vmul.f32 0.6931472, %v1389_v8  ;;  %1097 = vperm.xlu0 %1322, %v1168_v6   ;;  %v630_v37 = vpop.permute.xlu0 %629 }
 0x1db   :  { %v599_v28 = vsel %vm503_vm11, %v1807_v35, %v559_v45  ;;  %v577_v17 = vsel %vm576_vm13, %v574_v9, %v571_v5  ;;  %v604_v35 = vld [vmem:[%s2181_s5] sm:$0xff] }
 0x1dc   :  { %v1282_v16 = vpack.c.bf16 %v599_v28, %v597_v11  ;;  %v595_v18 = vsel %vm594_vm14, %v592_v14, %v589_v13  ;;  %v601_v20 = vsel %vm505_vm15, %v1800_v19, %v577_v17  ;;  %v606_v19 = vld [vmem:[%s2181_s5 + $0x10] sm:$0xff] }
 0x1dd   :  { %v603_v36 = vsel %vm507_vm1, %v1809_v43, %v595_v18  ;;  %v607_v43 = vld [vmem:[%s2181_s5 + $0x18] sm:$0xff]  ;;  %1324 = vset.pattern.permute.xlu1 %v1479_v2 }
 0x1de   :  { %1283 = vmatprep.subr.bf16.mxu1 %v1282_v16  ;;  %v1286_v15 = vpack.c.bf16 %v603_v36, %v601_v20  ;;  %1107 = vperm.xlu0 %1322, %v1089_v27  }
 0x1df   :  { %1285 = vmatpush1.bf16.msra.mxu1 %v1284_v3  ;;  %1183 = vperm.xlu1 %1324, %v1088_v24  }
 0x1e0   :  { %1287 = vmatprep.subr.bf16.mxu1 %v1286_v15 }
 0x1e2   :  { %1220 = vperm.xlu0 %1322, %v1217_v31  }
 0x1e3   :  { %1289 = vmatpush1.bf16.msra.mxu1 %v1288_v12  ;;  %1188 = vperm.xlu1 %1324, %v1089_v27  }
 0x1e6   :  { %1266 = vmatmul.mubr.msk.f32.vlgmr.msra.gmra.mrb[4].mxu1 %vm390_vm0, %v604_v35 }
 0x1e7   :  { %714 = vmatprep.mubr.f32.mxu1 %v1482_v25  ;;  %1325 = vset.pattern.permute.xlu1 %v1481_v7 }
 0x1e8   :  { %1139 = vperm.xlu1 %1325, %v1136_v32  }
 0x1ea   :  { %1267 = vmatmul.mubr.msk.f32.gmra.mrb[6].mxu1 %vm390_vm0, %v605_v63 }
 0x1eb   :  { %720 = vmatprep.mubr.f32.mxu1 %v1482_v25 }
 0x1ee   :  { %1268 = vmatmul.mubr.msk.f32.gmra.mrb[8].mxu1 %vm390_vm0, %v606_v19 }
 0x1ef   :  { %726 = vmatprep.mubr.f32.mxu1 %v1482_v25 }
 0x1f2   :  { %1269 = vmatmul.mubr.msk.f32.gmra.mrb[10].mxu1 %vm390_vm0, %v607_v43 }
 0x2b9   :  { %v710_v48 = vpop.f32.mrb[4].mxu1 }
 0x2ba   :  { %v1929_v50 = vadd.f32 %v710_v48, %v615_v33  ;;  %v712_v2 = vpop.f32.mrb[5].mxu1 }
 0x2bb   :  { %v1931_v30 = vadd.f32 %v712_v2, %v615_v33 }
 0x2bc   :  { %v733_v51 = vmin.f32 %v1929_v50, 20.0  ;;  %vm741_vm2 = vcmp.gt.f32.partialorder %v1929_v50, 20.0 }
 0x2bd   :  { %v734_v56 = vmin.f32 %v1931_v30, 20.0  ;;  %v716_v38 = vpop.f32.mrb[6].mxu1  ;;  %vm742_vm4 = vcmp.gt.f32.partialorder %v1931_v30, 20.0 }
 0x2be   :  { %v749_v46 = vmul.f32 1.442695, %v733_v51  ;;  %v1935_v49 = vadd.f32 %v716_v38, %v620_v55  ;;  %v718_v40 = vpop.f32.mrb[7].mxu1 }
 0x2bf   :  { %v751_v39 = vmul.f32 1.442695, %v734_v56  ;;  %v1937_v7 = vadd.f32 %v718_v40, %v620_v55 }
 0x2c0   :  { %1390 = vpow2.f32 %v749_v46  ;;  %v735_v41 = vmin.f32 %v1935_v49, 20.0  ;;  %vm743_vm5 = vcmp.gt.f32.partialorder %v1935_v49, 20.0 }
 0x2c1   :  { %1392 = vpow2.f32 %v751_v39  ;;  %v736_v58 = vmin.f32 %v1937_v7, 20.0  ;;  %v722_v61 = vpop.f32.mrb[8].mxu1  ;;  %vm744_vm6 = vcmp.gt.f32.partialorder %v1937_v7, 20.0 }
 0x2c2   :  { %v753_v44 = vmul.f32 1.442695, %v735_v41  ;;  %v1941_v59 = vadd.f32 %v722_v61, %v625_v42  ;;  %v724_v47 = vpop.f32.mrb[9].mxu1 }
 0x2c3   :  { %v755_v10 = vmul.f32 1.442695, %v736_v58  ;;  %v1943_v34 = vadd.f32 %v724_v47, %v625_v42 }
 0x2c4   :  { %1394 = vpow2.f32 %v753_v44  ;;  %v737_v52 = vmin.f32 %v1941_v59, 20.0  ;;  %vm745_vm11 = vcmp.gt.f32.partialorder %v1941_v59, 20.0 }
 0x2c5   :  { %1396 = vpow2.f32 %v755_v10  ;;  %v738_v54 = vmin.f32 %v1943_v34, 20.0  ;;  %v728_v57 = vpop.f32.mrb[10].mxu1  ;;  %vm746_vm1 = vcmp.gt.f32.partialorder %v1943_v34, 20.0 }
 0x2c6   :  { %v757_v0 = vmul.f32 1.442695, %v737_v52  ;;  %v1947_v22 = vadd.f32 %v728_v57, %v630_v37  ;;  %v730_v60 = vpop.f32.mrb[11].mxu1 }
 0x2c7   :  { %v759_v4 = vmul.f32 1.442695, %v738_v54  ;;  %v1949_v3 = vadd.f32 %v730_v60, %v630_v37 }
 0x2c8   :  { %1398 = vpow2.f32 %v757_v0  ;;  %v739_v62 = vmin.f32 %v1947_v22, 20.0  ;;  %vm747_vm12 = vcmp.gt.f32.partialorder %v1947_v22, 20.0 }
 0x2c9   :  { %1400 = vpow2.f32 %v759_v4  ;;  %v740_v21 = vmin.f32 %v1949_v3, 20.0 }
 0x2ca   :  { %v1391_v53 = vpop.eup %1390  ;;  %v761_v1 = vmul.f32 1.442695, %v739_v62 }
 0x2cb   :  { %v1393_v12 = vpop.eup %1392  ;;  %v765_v8 = vadd.f32 1.0, %v1391_v53  ;;  %v763_v45 = vmul.f32 1.442695, %v740_v21  ;;  %v768_v16 = vmul.f32 -0.5, %v1391_v53  ;;  %v771_v20 = vand.u32 2147483647, %v1391_v53 }
 0x2cc   :  { %1402 = vpow2.f32 %v761_v1  ;;  %v774_v5 = vadd.f32 1.0, %v1393_v12  ;;  %v777_v17 = vmul.f32 -0.5, %v1393_v12  ;;  %v780_v35 = vand.u32 2147483647, %v1393_v12 }
 0x2cd   :  { %1404 = vlog2.f32 %v765_v8  ;;  %v769_v23 = vadd.f32 1.0, %v768_v16  ;;  %vm1962_vm3 = vcmp.lt.f32.partialorder %v771_v20, 0.0004427343 }
 0x2ce   :  { %v1395_v9 = vpop.eup %1394  ;;  %1406 = vpow2.f32 %v763_v45  ;;  %v778_v6 = vadd.f32 1.0, %v777_v17  ;;  %vm1972_vm7 = vcmp.lt.f32.partialorder %v780_v35, 0.0004427343 }
 0x2cf   :  { %v1397_v11 = vpop.eup %1396  ;;  %v783_v28 = vadd.f32 1.0, %v1395_v9  ;;  %1408 = vlog2.f32 %v774_v5  ;;  %v786_v15 = vmul.f32 -0.5, %v1395_v9  ;;  %v789_v31 = vand.u32 2147483647, %v1395_v9 }
 0x2d0   :  { %v792_v13 = vadd.f32 1.0, %v1397_v11  ;;  %v795_v19 = vmul.f32 -0.5, %v1397_v11  ;;  %v798_v56 = vand.u32 2147483647, %v1397_v11  ;;  %v770_v40 = vmul.f32 %v1391_v53, %v769_v23 }
 0x2d1   :  { %1410 = vlog2.f32 %v783_v28  ;;  %v787_v2 = vadd.f32 1.0, %v786_v15  ;;  %v779_v41 = vmul.f32 %v1393_v12, %v778_v6  ;;  %vm1979_vm8 = vcmp.lt.f32.partialorder %v789_v31, 0.0004427343 }
 0x2d2   :  { %v1953_v14 = vpop.eup %1398  ;;  %1412 = vlog2.f32 %v792_v13  ;;  %v796_v55 = vadd.f32 1.0, %v795_v19  ;;  %vm799_vm9 = vcmp.lt.f32.partialorder %v798_v56, 0.0004427343 }
 0x2d3   :  { %v1955_v18 = vpop.eup %1400  ;;  %v801_v36 = vadd.f32 1.0, %v1953_v14  ;;  %v804_v39 = vmul.f32 -0.5, %v1953_v14  ;;  %v788_v54 = vmul.f32 %v1395_v9, %v787_v2  ;;  %v807_v57 = vand.u32 2147483647, %v1953_v14 }
 0x2d4   :  { %v810_v63 = vadd.f32 1.0, %v1955_v18  ;;  %v813_v42 = vmul.f32 -0.5, %v1955_v18  ;;  %v797_v4 = vmul.f32 %v1397_v11, %v796_v55 }
 0x2d5   :  { %1414 = vlog2.f32 %v801_v36  ;;  %v805_v21 = vadd.f32 1.0, %v804_v39  ;;  %v816_v36 = vand.u32 2147483647, %v1955_v18  ;;  %vm2007_vm10 = vcmp.lt.f32.partialorder %v807_v57, 0.0004427343 }
 0x2d6   :  { %v1959_v43 = vpop.eup %1402  ;;  %1416 = vlog2.f32 %v810_v63  ;;  %v814_v53 = vadd.f32 1.0, %v813_v42 }
 0x2d7   :  { %v1405_v24 = vpop.eup %1404  ;;  %v819_v32 = vadd.f32 1.0, %v1959_v43  ;;  %v822_v44 = vmul.f32 -0.5, %v1959_v43  ;;  %v825_v20 = vand.u32 2147483647, %v1959_v43  ;;  %vm817_vm14 = vcmp.lt.f32.partialorder %v816_v36, 0.0004427343 }
 0x2d8   :  { %v1969_v33 = vpop.eup %1406  ;;  %v767_v48 = vmul.f32 0.6931472, %v1405_v24  ;;  %v815_v24 = vmul.f32 %v1955_v18, %v814_v53 }
 0x2d9   :  { %1418 = vlog2.f32 %v819_v32  ;;  %v828_v38 = vadd.f32 1.0, %v1969_v33  ;;  %v1409_v46 = vpop.eup %1408  ;;  %v831_v1 = vmul.f32 -0.5, %v1969_v33  ;;  %v823_v5 = vadd.f32 1.0, %v822_v44 }
 0x2da   :  { %v776_v47 = vmul.f32 0.6931472, %v1409_v46  ;;  %v773_v52 = vsel %vm1962_vm3, %v770_v40, %v767_v48  ;;  %vm826_vm13 = vcmp.lt.f32.partialorder %v825_v20, 0.0004427343 }
 0x2db   :  { %v1411_v58 = vpop.eup %1410  ;;  %1420 = vlog2.f32 %v828_v38  ;;  %v837_v8 = vsel %vm741_vm2, %v1929_v50, %v773_v52  ;;  %v832_v35 = vadd.f32 1.0, %v831_v1  ;;  %v824_v6 = vmul.f32 %v1959_v43, %v823_v5 }
 0x2dc   :  { %v1413_v10 = vpop.eup %1412  ;;  %v785_v37 = vmul.f32 0.6931472, %v1411_v58  ;;  %v782_v0 = vsel %vm1972_vm7, %v779_v41, %v776_v47  ;;  %vm748_vm2 = vcmp.gt.f32.partialorder %v1949_v3, 20.0  ;;  %v861_v58 = vpop.permute.xlu0 %860 }
 0x2dd   :  { %v794_v60 = vmul.f32 0.6931472, %v1413_v10  ;;  %v838_v16 = vsel %vm742_vm4, %v1931_v30, %v782_v0  ;;  %v834_v30 = vand.u32 2147483647, %v1969_v33  ;;  %v833_v48 = vmul.f32 %v1969_v33, %v832_v35  ;;  %v856_v33 = vpop.permute.xlu1 %855 }
 0x2de   :  { %v791_v62 = vsel %vm1979_vm8, %v788_v54, %v785_v37 }
 0x2df   :  { %v1415_v12 = vpop.eup %1414  ;;  %v839_v45 = vsel %vm743_vm5, %v1935_v49, %v791_v62  ;;  %v800_v9 = vsel %vm799_vm9, %v797_v4, %v794_v60  ;;  %v806_v49 = vmul.f32 %v1953_v14, %v805_v21  ;;  %vm835_vm15 = vcmp.lt.f32.partialorder %v834_v30, 0.0004427343 }
 0x2e0   :  { %v1417_v11 = vpop.eup %1416  ;;  %v1292_v28 = vpack.c.bf16 %v839_v45, %v837_v8  ;;  %v803_v13 = vmul.f32 0.6931472, %v1415_v12  ;;  %v840_v17 = vsel %vm744_vm6, %v1937_v7, %v800_v9  ;;  %v871_v8 = vpop.permute.xlu0 %870 }
 0x2e1   :  { %v1290_v50 = vpack.c.bf16 %v840_v17, %v838_v16  ;;  %v812_v15 = vmul.f32 0.6931472, %v1417_v11  ;;  %v866_v57 = vpop.permute.xlu1 %865 }
 0x2e2   :  { %v809_v7 = vsel %vm2007_vm10, %v806_v49, %v803_v13 }
 0x2e3   :  { %v1419_v63 = vpop.eup %1418  ;;  %1291 = vmatprep.subr.bf16.mxu0 %v1290_v50  ;;  %v818_v31 = vsel %vm817_vm14, %v815_v24, %v812_v15  ;;  %v841_v2 = vsel %vm745_vm11, %v1941_v59, %v809_v7  ;;  %v845_v59 = vld [vmem:[%s2183_s7] sm:$0xff] }
 0x2e4   :  { %v821_v23 = vmul.f32 0.6931472, %v1419_v63  ;;  %1293 = vmatpush1.bf16.msra.mxu0 %v1292_v28  ;;  %v842_v55 = vsel %vm746_vm1, %v1943_v34, %v818_v31  ;;  %v847_v34 = vld [vmem:[%s2183_s7 + $0x10] sm:$0xff] }
 0x2e5   :  { %v1421_v14 = vpop.eup %1420 }
 0x2e6   :  { %v827_v27 = vsel %vm826_vm13, %v824_v6, %v821_v23  ;;  %v830_v32 = vmul.f32 0.6931472, %v1421_v14 }
 0x2e7   :  { %v843_v51 = vsel %vm747_vm12, %v1947_v22, %v827_v27  ;;  %v846_v22 = vld [vmem:[%s2183_s7 + $0x8] sm:$0xff]  ;;  %v2068_v27 = vpop.permute.xlu1 %1092 }
 0x2e8   :  { %v1296_v18 = vpack.c.bf16 %v843_v51, %v841_v2  ;;  %v836_v43 = vsel %vm835_vm15, %v833_v48, %v830_v32 }
 0x2e9   :  { %v844_v56 = vsel %vm748_vm2, %v1949_v3, %v836_v43  ;;  %v848_v3 = vld [vmem:[%s2183_s7 + $0x18] sm:$0xff]  ;;  %s1484_s7 = smov [#allocation2]  }
 0x2ea   :  { %v1294_v38 = vpack.c.bf16 %v844_v56, %v842_v55  ;;  %s1251_s2 = sshll.u32 %s1484_s7, 4  ;;  %s1252_s2 = int_to_ptr.vmem [resolvable:$true] %s1251_s2 }
 0x2eb   :  { %s1454_s3 = scalar_lea.vmem %s1252_s2, 64  ;;  %p1459_p1 = scmp.lt.s32.totalorder %s1252_s2, %s1252_s2 }
 0x2ec   :  { %1295 = vmatprep.subr.bf16.mxu0 %v1294_v38  ;;  %p1455_p0 = scmp.ne.s32.totalorder %s1252_s2, %s1454_s3  ;;  %p1460_p2 = scmp.lt.s32.totalorder %s1454_s3, %s1454_s3 }
 0x2ed   :  { %1297 = vmatpush1.bf16.msra.mxu0 %v1296_v18 }
 0x2ee   :  { %p1461_p3 = por %p1460_p2, %p1459_p1 }
 0x2f0   :  { %1270 = vmatmul.mubr.msk.f32.vlgmr.msra.gmra.mrb[4].mxu0 %vm390_vm0, %v845_v59  ;;  %p1462_p4 = pnand %p1461_p3, %p1455_p0 }
 0x2f1   :  { %955 = vmatprep.mubr.f32.mxu0 %v1482_v25 }
 0x2f4   :  { %1271 = vmatmul.mubr.msk.f32.gmra.mrb[6].mxu0 %vm390_vm0, %v846_v22 }
 0x2f5   :  { %961 = vmatprep.mubr.f32.mxu0 %v1482_v25 }
 0x2f8   :  { %1272 = vmatmul.mubr.msk.f32.gmra.mrb[8].mxu0 %vm390_vm0, %v847_v34 }
 0x2f9   :  { %967 = vmatprep.mubr.f32.mxu0 %v1482_v25 }
 0x2fc   :  { %1273 = vmatmul.mubr.msk.f32.gmra.mrb[10].mxu0 %vm390_vm0, %v848_v3 }
 0x3c3   :  { %v951_v46 = vpop.f32.mrb[4].mxu0 }
 0x3c4   :  { %v2044_v40 = vadd.f32 %v951_v46, %v856_v33  ;;  %v953_v39 = vpop.f32.mrb[5].mxu0 }
 0x3c5   :  { %v2046_v41 = vadd.f32 %v953_v39, %v856_v33 }
 0x3c6   :  { %v974_v42 = vmin.f32 %v2044_v40, 20.0  ;;  %vm982_vm0 = vcmp.gt.f32.partialorder %v2044_v40, 20.0 }
 0x3c7   :  { %v975_v61 = vmin.f32 %v2046_v41, 20.0  ;;  %v957_v44 = vpop.f32.mrb[6].mxu0  ;;  %vm983_vm3 = vcmp.gt.f32.partialorder %v2046_v41, 20.0 }
 0x3c8   :  { %v990_v25 = vmul.f32 1.442695, %v974_v42  ;;  %v2050_v47 = vadd.f32 %v957_v44, %v861_v58  ;;  %v959_v10 = vpop.f32.mrb[7].mxu0  ;;  %v2080_v42 = vpop.permute.xlu1 %1173 }
 0x3c9   :  { %v992_v52 = vmul.f32 1.442695, %v975_v61  ;;  %v2052_v37 = vadd.f32 %v959_v10, %v861_v58 }
 0x3ca   :  { %1422 = vpow2.f32 %v990_v25  ;;  %v976_v54 = vmin.f32 %v2050_v47, 20.0  ;;  %vm984_vm6 = vcmp.gt.f32.partialorder %v2050_v47, 20.0 }
 0x3cb   :  { %1424 = vpow2.f32 %v992_v52  ;;  %v977_v0 = vmin.f32 %v2052_v37, 20.0  ;;  %v963_v60 = vpop.f32.mrb[8].mxu0  ;;  %vm985_vm8 = vcmp.gt.f32.partialorder %v2052_v37, 20.0 }
 0x3cc   :  { %v994_v4 = vmul.f32 1.442695, %v976_v54  ;;  %v2056_v62 = vadd.f32 %v963_v60, %v866_v57  ;;  %v965_v21 = vpop.f32.mrb[9].mxu0 }
 0x3cd   :  { %v996_v53 = vmul.f32 1.442695, %v977_v0  ;;  %v2058_v1 = vadd.f32 %v965_v21, %v866_v57 }
 0x3ce   :  { %1426 = vpow2.f32 %v994_v4  ;;  %v978_v12 = vmin.f32 %v2056_v62, 20.0  ;;  %vm986_vm10 = vcmp.gt.f32.partialorder %v2056_v62, 20.0 }
 0x3cf   :  { %1428 = vpow2.f32 %v996_v53  ;;  %v979_v45 = vmin.f32 %v2058_v1, 20.0  ;;  %v969_v5 = vpop.f32.mrb[10].mxu0  ;;  %vm987_vm12 = vcmp.gt.f32.partialorder %v2058_v1, 20.0 }
 0x3d0   :  { %v998_v9 = vmul.f32 1.442695, %v978_v12  ;;  %v2062_v11 = vadd.f32 %v969_v5, %v871_v8  ;;  %v971_v28 = vpop.f32.mrb[11].mxu0 }
 0x3d1   :  { %v1000_v13 = vmul.f32 1.442695, %v979_v45  ;;  %v2064_v16 = vadd.f32 %v971_v28, %v871_v8  ;;  %v1179_v8 = vpop.permute.xlu0 %1178 }
 0x3d2   :  { %1430 = vpow2.f32 %v998_v9  ;;  %v980_v17 = vmin.f32 %v2062_v11, 20.0  ;;  %vm988_vm15 = vcmp.gt.f32.partialorder %v2062_v11, 20.0 }
 0x3d3   :  { %1432 = vpow2.f32 %v1000_v13  ;;  %v981_v20 = vmin.f32 %v2064_v16, 20.0  ;;  %vm989_vm1 = vcmp.gt.f32.partialorder %v2064_v16, 20.0 }
 0x3d4   :  { %v1423_v50 = vpop.eup %1422  ;;  %v1002_v36 = vmul.f32 1.442695, %v980_v17 }
 0x3d5   :  { %v1425_v49 = vpop.eup %1424  ;;  %v1004_v15 = vmul.f32 1.442695, %v981_v20  ;;  %v1006_v35 = vadd.f32 1.0, %v1423_v50  ;;  %v1009_v19 = vmul.f32 -0.5, %v1423_v50  ;;  %v1012_v32 = vand.u32 2147483647, %v1423_v50 }
 0x3d6   :  { %1434 = vpow2.f32 %v1002_v36  ;;  %v1015_v63 = vadd.f32 1.0, %v1425_v49  ;;  %v1018_v6 = vmul.f32 -0.5, %v1425_v49  ;;  %v1021_v48 = vand.u32 2147483647, %v1425_v49 }
 0x3d7   :  { %1436 = vpow2.f32 %v1004_v15  ;;  %v1010_v31 = vadd.f32 1.0, %v1009_v19  ;;  %vm2072_vm4 = vcmp.lt.f32.partialorder %v1012_v32, 0.0004427343 }
 0x3d8   :  { %v1427_v30 = vpop.eup %1426  ;;  %1438 = vlog2.f32 %v1006_v35  ;;  %v1019_v55 = vadd.f32 1.0, %v1018_v6  ;;  %vm2076_vm5 = vcmp.lt.f32.partialorder %v1021_v48, 0.0004427343 }
 0x3d9   :  { %v1429_v7 = vpop.eup %1428  ;;  %v1024_v23 = vadd.f32 1.0, %v1427_v30  ;;  %v1027_v24 = vmul.f32 -0.5, %v1427_v30  ;;  %1440 = vlog2.f32 %v1015_v63  ;;  %v1030_v51 = vand.u32 2147483647, %v1427_v30  ;;  %v1103_v63 = vpop.permute.xlu1 %1102 }
 0x3da   :  { %v1033_v14 = vadd.f32 1.0, %v1429_v7  ;;  %v1036_v18 = vmul.f32 -0.5, %v1429_v7  ;;  %v1039_v22 = vand.u32 2147483647, %v1429_v7  ;;  %v1011_v33 = vmul.f32 %v1423_v50, %v1010_v31 }
 0x3db   :  { %1442 = vlog2.f32 %v1024_v23  ;;  %v1028_v59 = vadd.f32 1.0, %v1027_v24  ;;  %vm2085_vm7 = vcmp.lt.f32.partialorder %v1030_v51, 0.0004427343  ;;  %v1020_v52 = vmul.f32 %v1425_v49, %v1019_v55 }
 0x3dc   :  { %v1431_v2 = vpop.eup %1430  ;;  %1444 = vlog2.f32 %v1033_v14  ;;  %v1037_v44 = vadd.f32 1.0, %v1036_v18  ;;  %vm2093_vm9 = vcmp.lt.f32.partialorder %v1039_v22, 0.0004427343 }
 0x3dd   :  { %v1433_v43 = vpop.eup %1432  ;;  %v1042_v56 = vadd.f32 1.0, %v1431_v2  ;;  %v1045_v38 = vmul.f32 -0.5, %v1431_v2  ;;  %v1048_v25 = vand.u32 2147483647, %v1431_v2  ;;  %v1029_v4 = vmul.f32 %v1427_v30, %v1028_v59  ;;  %v1098_v59 = vpop.permute.xlu0 %1097 }
 0x3de   :  { %v1051_v34 = vadd.f32 1.0, %v1433_v43  ;;  %v1054_v3 = vmul.f32 -0.5, %v1433_v43  ;;  %v1057_v57 = vand.u32 2147483647, %v1433_v43  ;;  %v1038_v13 = vmul.f32 %v1429_v7, %v1037_v44  ;;  %v1184_v44 = vpop.permute.xlu1 %1183 }
 0x3df   :  { %1446 = vlog2.f32 %v1042_v56  ;;  %v1046_v54 = vadd.f32 1.0, %v1045_v38  ;;  %vm2101_vm11 = vcmp.lt.f32.partialorder %v1048_v25, 0.0004427343 }
 0x3e0   :  { %v2082_v58 = vpop.eup %1434  ;;  %1448 = vlog2.f32 %v1051_v34  ;;  %v1055_v53 = vadd.f32 1.0, %v1054_v3  ;;  %vm2109_vm13 = vcmp.lt.f32.partialorder %v1057_v57, 0.0004427343 }
 0x3e1   :  { %v2089_v10 = vpop.eup %1436  ;;  %v1060_v0 = vadd.f32 1.0, %v2082_v58  ;;  %v1063_v5 = vmul.f32 -0.5, %v2082_v58  ;;  %v1066_v9 = vand.u32 2147483647, %v2082_v58  ;;  %v1047_v15 = vmul.f32 %v1431_v2, %v1046_v54 }
 0x3e2   :  { %v1439_v60 = vpop.eup %1438  ;;  %v1069_v12 = vadd.f32 1.0, %v2089_v10  ;;  %v1072_v20 = vmul.f32 -0.5, %v2089_v10  ;;  %v1056_v23 = vmul.f32 %v1433_v43, %v1055_v53  ;;  %v1075_v6 = vand.u32 2147483647, %v2089_v10 }
 0x3e3   :  { %v1008_v45 = vmul.f32 0.6931472, %v1439_v60  ;;  %1450 = vlog2.f32 %v1060_v0  ;;  %v1441_v28 = vpop.eup %1440  ;;  %v1064_v31 = vadd.f32 1.0, %v1063_v5  ;;  %vm2119_vm14 = vcmp.lt.f32.partialorder %v1066_v9, 0.0004427343 }
 0x3e4   :  { %1452 = vlog2.f32 %v1069_v12  ;;  %v1017_v49 = vmul.f32 0.6931472, %v1441_v28  ;;  %v1073_v51 = vadd.f32 1.0, %v1072_v20  ;;  %vm1076_vm2 = vcmp.lt.f32.partialorder %v1075_v6, 0.0004427343  ;;  %v1108_v20 = vpop.permute.xlu0 %1107 }
 0x3e5   :  { %v1443_v50 = vpop.eup %1442  ;;  %v1014_v36 = vsel %vm2072_vm4, %v1011_v33, %v1008_v45  ;;  %v1065_v54 = vmul.f32 %v2082_v58, %v1064_v31 }
 0x3e6   :  { %v1445_v19 = vpop.eup %1444  ;;  %v1026_v30 = vmul.f32 0.6931472, %v1443_v50  ;;  %v1078_v7 = vsel %vm982_vm0, %v2044_v40, %v1014_v36  ;;  %v1023_v14 = vsel %vm2076_vm5, %v1020_v52, %v1017_v49  ;;  %v1074_v5 = vmul.f32 %v2089_v10, %v1073_v51  ;;  %v1189_v49 = vpop.permute.xlu1 %1188 }
 0x3e7   :  { %v1035_v24 = vmul.f32 0.6931472, %v1445_v19  ;;  %v1079_v2 = vsel %vm983_vm3, %v2046_v41, %v1023_v14  ;;  %v1110_v40 = vmul.f32 %v2068_v27, %v1078_v7  ;;  %v1191_v38 = vmul.f32 %v2080_v42, %v1078_v7 }
 0x3e8   :  { %v1032_v48 = vsel %vm2085_vm7, %v1029_v4, %v1026_v30  ;;  %v1111_v56 = vmul.f32 %v2068_v27, %v1079_v2  ;;  %v1192_v39 = vmul.f32 %v2080_v42, %v1079_v2  ;;  %vm1164_vm0 = vcmp.lt.s32.totalorder %v65_v26, 256 }
 0x3e9   :  { %v1447_v18 = vpop.eup %1446  ;;  %v1041_v43 = vsel %vm2093_vm9, %v1038_v13, %v1035_v24  ;;  %v1080_v55 = vsel %vm984_vm6, %v2050_v47, %v1032_v48 }
 0x3ea   :  { %v1449_v41 = vpop.eup %1448  ;;  %v1081_v22 = vsel %vm985_vm8, %v2052_v37, %v1041_v43  ;;  %v1193_v34 = vmul.f32 %v1179_v8, %v1080_v55  ;;  %v1112_v3 = vmul.f32 %v1098_v59, %v1080_v55  ;;  %v1044_v33 = vmul.f32 0.6931472, %v1447_v18 }
 0x3eb   :  { %v1194_v46 = vmul.f32 %v1179_v8, %v1081_v22  ;;  %v1113_v61 = vmul.f32 %v1098_v59, %v1081_v22  ;;  %v1053_v47 = vmul.f32 0.6931472, %v1449_v41  ;;  %v1483_v55 = vmov 1966171168  }
 0x3ec   :  { %v1199_v27 = vadd.f32 %v1193_v34, %v1191_v38  ;;  %v1118_v25 = vadd.f32 %v1112_v3, %v1110_v40  ;;  %v1050_v52 = vsel %vm2101_vm11, %v1047_v15, %v1044_v33 }
 0x3ed   :  { %v1451_v57 = vpop.eup %1450  ;;  %v1208_v0 = vadd.f32 %v1194_v46, %v1192_v39  ;;  %v1127_v60 = vadd.f32 %v1113_v61, %v1111_v56  ;;  %v1059_v37 = vsel %vm2109_vm13, %v1056_v23, %v1053_v47  ;;  %v1082_v42 = vsel %vm986_vm10, %v2056_v62, %v1050_v52  ;;  %v1140_v61 = vpop.permute.xlu1 %1139 }
 0x3ee   :  { %v1453_v4 = vpop.eup %1452  ;;  %v1083_v21 = vsel %vm987_vm12, %v2058_v1, %v1059_v37  ;;  %v1114_v53 = vmul.f32 %v1103_v63, %v1082_v42  ;;  %v1062_v12 = vmul.f32 0.6931472, %v1451_v57  ;;  %v1195_v8 = vmul.f32 %v1184_v44, %v1082_v42 }
 0x3ef   :  { %v1115_v45 = vmul.f32 %v1103_v63, %v1083_v21  ;;  %v1071_v58 = vmul.f32 0.6931472, %v1453_v4  ;;  %v1196_v9 = vmul.f32 %v1184_v44, %v1083_v21  ;;  %v1148_v56 = vunpack.c.l.s4 %v1483_v55 }
 0x3f0   :  { %v1119_v28 = vadd.f32 %v1118_v25, %v1114_v53  ;;  %v1068_v13 = vsel %vm2119_vm14, %v1065_v54, %v1062_v12  ;;  %v1200_v17 = vadd.f32 %v1199_v27, %v1195_v8  ;;  %v1221_v27 = vpop.permute.xlu0 %1220 }
 0x3f1   :  { %v1128_v62 = vadd.f32 %v1127_v60, %v1115_v45  ;;  %v1077_v50 = vsel %vm1076_vm2, %v1074_v5, %v1071_v58  ;;  %v1084_v1 = vsel %vm988_vm15, %v2062_v11, %v1068_v13  ;;  %v1209_v36 = vadd.f32 %v1208_v0, %v1196_v9 }
 0x3f2   :  { %v1085_v10 = vsel %vm989_vm1, %v2064_v16, %v1077_v50  ;;  %v1116_v15 = vmul.f32 %v1108_v20, %v1084_v1  ;;  %v1197_v35 = vmul.f32 %v1189_v49, %v1084_v1  ;;  %v1149_v39 = vunpack.c.0.s8 %v1148_v56 }
 0x3f3   :  { %v1117_v63 = vmul.f32 %v1108_v20, %v1085_v10  ;;  %v1198_v19 = vmul.f32 %v1189_v49, %v1085_v10 }
 0x3f4   :  { %v1120_v30 = vadd.f32 %v1119_v28, %v1116_v15  ;;  %v1201_v7 = vadd.f32 %v1200_v17, %v1197_v35  ;;  %v1152_v0 = vsub.s32 %v1149_v39, %v1618_v29 }
 0x3f5   :  { %v1129_v23 = vadd.f32 %v1128_v62, %v1117_v63  ;;  %v1210_v6 = vadd.f32 %v1209_v36, %v1198_v19 }
 0x3f6   :  { %v1121_v24 = vrot.slane %v1120_v30, 4  ;;  %v1202_v14 = vrot.slane %v1201_v7, 4 }
 0x3f7   :  { %v1130_v31 = vrot.slane %v1129_v23, 4  ;;  %v1211_v32 = vrot.slane %v1210_v6, 4 }
 0x3f8   :  { %v1122_v48 = vadd.f32 %v1121_v24, %v1120_v30  ;;  %v1203_v11 = vadd.f32 %v1202_v14, %v1201_v7 }
 0x3f9   :  { %v1131_v2 = vadd.f32 %v1130_v31, %v1129_v23  ;;  %v1212_v40 = vadd.f32 %v1211_v32, %v1210_v6 }
 0x3fa   :  { %v1204_v51 = vrot.slane %v1203_v11, 2  ;;  %v1123_v18 = vrot.slane %v1122_v48, 2 }
 0x3fb   :  { %v1213_v43 = vrot.slane %v1212_v40, 2  ;;  %v1132_v16 = vrot.slane %v1131_v2, 2 }
 0x3fc   :  { %v1205_v38 = vadd.f32 %v1204_v51, %v1203_v11  ;;  %v1124_v59 = vadd.f32 %v1123_v18, %v1122_v48 }
 0x3fd   :  { %v1214_v41 = vadd.f32 %v1213_v43, %v1212_v40  ;;  %v1133_v22 = vadd.f32 %v1132_v16, %v1131_v2 }
 0x3fe   :  { %v1206_v34 = vrot.slane %v1205_v38, 1  ;;  %v1125_v3 = vrot.slane %v1124_v59, 1 }
 0x3ff   :  { %v1215_v33 = vrot.slane %v1214_v41, 1  ;;  %v1134_v46 = vrot.slane %v1133_v22, 1 }
 0x400   :  { %v1207_v47 = vadd.f32 %v1206_v34, %v1205_v38  ;;  %v1126_v44 = vadd.f32 %v1125_v3, %v1124_v59 }
 0x401   :  { %v1216_v25 = vadd.f32 %v1215_v33, %v1214_v41  ;;  %v1135_v52 = vadd.f32 %v1134_v46, %v1133_v22 }
 0x402   :  { %v1142_v54 = vadd.f32 %v1140_v61, %v1126_v44  ;;  %v1223_v57 = vadd.f32 %v1221_v27, %v1207_v47 }
 0x403   :  { %v1143_v60 = vadd.f32 %v1140_v61, %v1135_v52  ;;  %v1224_v37 = vadd.f32 %v1221_v27, %v1216_v25 }
 0x405   :  { %v1146_v42 = vcombine.low %v1142_v54, %v1143_v60  ;;  %v1227_v4 = vcombine.low %v1223_v57, %v1224_v37 }
 0x407   :  { %v1153_v21 = vrot.slane %v1146_v42, %v1152_v0  ;;  %v1234_v53 = vrot.slane %v1227_v4, %v1152_v0 }
 0x409   :  { %v1160_v12 = vrot.slane %v1153_v21, %v1152_v0  ;;  %v1241_v8 = vrot.slane %v1234_v53, %v1152_v0 }
 0x40b   :  { %1166 = vst.msk [vmem:[#allocation2] ss:$2 sm:$0x3] %vm1164_vm0, %v1160_v12  ;;  %1244 = vst.msk [vmem:[#allocation2 + $0x1] ss:$2 sm:$0x3] %vm1164_vm0, %v1241_v8 }
 0x40c   :  { %1465 = shalt.err (!%p1462_p4)
}
 0x40d   :  { %s1466_s30 = scalar_lea.hbm %s2187_s11, 64 }
 0x40e   :  { %p1467_p5 = scmp.ne.s32.totalorder %s2187_s11, %s1466_s30  ;;  %p1470_p6 = scmp.lt.u32.totalorder %s1466_s30, %s2187_s11 }
 0x410   :  { %p1472_p7 = pnand %p1470_p6, %p1467_p5 }
 0x412   :  { %1475 = shalt.err (!%p1472_p7)
}
 0x413   :  { %1254 = dma.vmem_to_hbm [thread:$0]  %s1252_s2, 64, %s2187_s11, [#allocation3]  }
 0x414   :  { %1476 = dma.done.wait [#allocation3], 64  }
 0x415   :  { %1477 = vsyncadd [#allocation3], 4294967232 }
 0x416   :  { %1258 = vsyncpa [#allocation3], 1 }

</bundles_post_ra>
